<compile_context>
chip_gen: v5e
topology: v5e:2x2
jax: 0.10.0
libtpu: 0.0.40
codegen_flags: <defaults>
</compile_context>

<pallas_src>
import functools
import math

import numpy as np
import jax
import jax.numpy as jnp
from jax.experimental import pallas as pl
from jax.experimental.pallas import tpu as pltpu

# ---------------- small config consistent with the module's forward ----------------
VOCAB = 256          # embedding rows (real vocab + n_ctx position slots at the end)
N_CTX = 8            # sequence length / number of position slots
N_EMBD = 64
N_HEAD = 2
N_LAYER = 2
HEAD_DIM = N_EMBD // N_HEAD
BATCH = 2
LN_EPS = 1e-5
NEG_MASK = -1e12     # pos_emb_mask value (-1e12 as in the PyTorch module)
ATTN_SCALE = 1.0 / math.sqrt(HEAD_DIM)
_GELU_C = math.sqrt(2.0 / math.pi)

# ---- layout of the packed "aux" slab (one row = one bias / LN vector, 128-lane aligned) ----
R_PROJ_B, R_LN1_G, R_LN1_B, R_MLP_B2, R_LN2_G, R_LN2_B, R_MLP_B1 = range(7)
R_QKVB0 = 7                                  # rows 7..7+3*N_HEAD-1: per-head q/k/v biases
ROWS_PER_LAYER = 7 + 3 * N_HEAD              # 13
AUX_W = max(VOCAB, 4 * N_EMBD)               # 256 (mlp_b1 and pos_emb_mask both fit)


# ------------------------------ in-kernel helpers ------------------------------------
def _layernorm(x, g, b):
    mu = jnp.mean(x, axis=-1, keepdims=True)
    var = jnp.mean(jnp.square(x - mu), axis=-1, keepdims=True)
    return (x - mu) * jax.lax.rsqrt(var + LN_EPS) * g + b


def _gelu(x):
    # exact GPT gelu: 0.5*x*(1+tanh(sqrt(2/pi)*(x+0.044715*x^3)))
    return 0.5 * x * (1.0 + jnp.tanh(_GELU_C * (x + 0.044715 * x * x * x)))


def _row(aux_ref, r, width):
    """Static (1, width) slice of the packed aux slab (lane offset 0, always aligned)."""
    return aux_ref[r:r + 1, 0:width]


# ----------------------------------- fused kernel ------------------------------------
def _comet_kernel(ids_ref, masks_ref, embed_ref, qkvw_ref, projw_ref,
                  w1_ref, w2_ref, aux_ref, out_ref, *,
                  n_layer, return_probs, return_acts):
    n_tok = out_ref.shape[0]

    embed = embed_ref[...]                                         # (V, D) bf16, tied table

    # --- embedding gather as one-hot matmul: (tok_onehot + pos_onehot) @ embed ---
    ids = ids_ref[...]                                             # (N, 2) int32
    tok = ids[:, 0:1]
    pos = ids[:, 1:2]
    col = jax.lax.broadcasted_iota(jnp.int32, (n_tok, VOCAB), 1)
    onehot = ((col == tok).astype(jnp.float32)
              + (col == pos).astype(jnp.float32))                  # (N, V) f32 elementwise
    h = jnp.dot(onehot.astype(jnp.bfloat16), embed,
                preferred_element_type=jnp.float32)                # (N, D) f32

    amask = masks_ref[0]                                           # (N, N) 1/0 causal+batch
    addm = masks_ref[1]                                            # (N, N) 0 / -1e9 (hoisted)

    for l in range(n_layer):
        base = l * ROWS_PER_LAYER
        hb = h.astype(jnp.bfloat16)

        # --- attention sublayer (post-LN, GPT style); per-head wq/wk/wv from host slab ---
        heads = []
        for hd in range(N_HEAD):
            widx = (l * N_HEAD + hd) * 3
            q = jnp.dot(hb, qkvw_ref[widx + 0],
                        preferred_element_type=jnp.float32) \
                + _row(aux_ref, base + R_QKVB0 + 3 * hd + 0, HEAD_DIM)
            k = jnp.dot(hb, qkvw_ref[widx + 1],
                        preferred_element_type=jnp.float32) \
                + _row(aux_ref, base + R_QKVB0 + 3 * hd + 1, HEAD_DIM)
            v = jnp.dot(hb, qkvw_ref[widx + 2],
                        preferred_element_type=jnp.float32) \
                + _row(aux_ref, base + R_QKVB0 + 3 * hd + 2, HEAD_DIM)

            s = jax.lax.dot_general(q.astype(jnp.bfloat16), k.astype(jnp.bfloat16),
                                    (((1,), (1,)), ((), ())),
                                    preferred_element_type=jnp.float32) * ATTN_SCALE
            s = s * amask + addm                    # original: w*b - 1e9*(1-b)
            s = s - jnp.max(s, axis=-1, keepdims=True)
            p = jnp.exp(s)
            p = p / jnp.sum(p, axis=-1, keepdims=True)
            heads.append(jnp.dot(p.astype(jnp.bfloat16), v.astype(jnp.bfloat16),
                                 preferred_element_type=jnp.float32))   # (N, Dh)

        # merge heads once, single output-projection matmul
        ho = jnp.concatenate(heads, axis=-1).astype(jnp.bfloat16)       # (N, D)
        attn = jnp.dot(ho, projw_ref[l], preferred_element_type=jnp.float32) \
            + _row(aux_ref, base + R_PROJ_B, N_EMBD)
        n1 = _layernorm(h + attn,
                        _row(aux_ref, base + R_LN1_G, N_EMBD),
                        _row(aux_ref, base + R_LN1_B, N_EMBD))

        # --- MLP sublayer ---
        nb = n1.astype(jnp.bfloat16)
        m = _gelu(jnp.dot(nb, w1_ref[l], preferred_element_type=jnp.float32)
                  + _row(aux_ref, base + R_MLP_B1, 4 * N_EMBD))
        m = jnp.dot(m.astype(jnp.bfloat16), w2_ref[l],
                    preferred_element_type=jnp.float32) \
            + _row(aux_ref, base + R_MLP_B2, N_EMBD)
        h = _layernorm(n1 + m,
                       _row(aux_ref, base + R_LN2_G, N_EMBD),
                       _row(aux_ref, base + R_LN2_B, N_EMBD))

    # --- tied LM head: h @ embed^T without materializing the transpose ---
    logits = jax.lax.dot_general(h.astype(jnp.bfloat16), embed,
                                 (((1,), (1,)), ((), ())),
                                 preferred_element_type=jnp.float32)    # (N, V), lane-dense
    if return_probs or return_acts:
        logits = logits + _row(aux_ref, n_layer * ROWS_PER_LAYER, VOCAB)
    if return_probs:
        logits = logits - jnp.max(logits, axis=-1, keepdims=True)
        e = jnp.exp(logits)
        logits = e / jnp.sum(e, axis=-1, keepdims=True)
    out_ref[...] = logits.astype(out_ref.dtype)


# -------------------------------- pallas wrapper --------------------------------------
def _single_block_call(kernel, out_shape, *arrays):
    """Single-invocation pallas_call: each array is one full VMEM block (small shapes)."""
    in_specs = [pl.BlockSpec(a.shape, lambda i, _nd=a.ndim: (0,) * _nd) for a in arrays]
    out_spec = pl.BlockSpec(out_shape.shape, lambda i, _nd=len(out_shape.shape): (0,) * _nd)
    return pl.pallas_call(
        kernel, out_shape=out_shape, grid=(1,),
        in_specs=in_specs, out_specs=out_spec,
        compiler_params=pltpu.CompilerParams(dimension_semantics=("arbitrary",)),
    )(*arrays)


def _masks(batch, seq):
    """(2, B*T, B*T): [0]=1/0 (same batch AND col<=row) mask, [1]=-1e9*(1-mask). Host-built."""
    r = np.arange(batch * seq)
    same = (r[:, None] // seq) == (r[None, :] // seq)
    causal = r[None, :] <= r[:, None]
    amask = (same & causal).astype(np.float32)
    add = (-1e9 * (1.0 - amask)).astype(np.float32)
    return jnp.asarray(np.stack([amask, add], axis=0))


# -------------------------------- parameters -----------------------------------------
def init_params(key):
    keys = jax.random.split(key, 1 + N_LAYER)

    def w(k, shape):
        return (0.02 * jax.random.normal(k, shape)).astype(jnp.float32)

    def zeros(*shape):
        return jnp.zeros(shape, jnp.float32)

    def ones(*shape):
        return jnp.ones(shape, jnp.float32)

    params = {
        "embed": w(keys[0], (VOCAB, N_EMBD)),
        # pos_emb_mask hoisted to init (register_buffer equivalent)
        "pos_emb_mask": jnp.zeros((1, VOCAB), jnp.float32).at[:, -N_CTX:].set(NEG_MASK),
        "blocks": [],
    }
    for l in range(N_LAYER):
        k0, k1, k2, k3 = jax.random.split(keys[1 + l], 4)
        params["blocks"].append(dict(
            attn_w=w(k0, (N_EMBD, 3 * N_EMBD)), attn_b=zeros(1, 3 * N_EMBD),
            proj_w=w(k1, (N_EMBD, N_EMBD)), proj_b=zeros(1, N_EMBD),
            ln1_g=ones(1, N_EMBD), ln1_b=zeros(1, N_EMBD),
            mlp_w1=w(k2, (N_EMBD, 4 * N_EMBD)), mlp_b1=zeros(1, 4 * N_EMBD),
            mlp_w2=w(k3, (4 * N_EMBD, N_EMBD)), mlp_b2=zeros(1, N_EMBD),
            ln2_g=ones(1, N_EMBD), ln2_b=zeros(1, N_EMBD),
        ))
    return params


def pack_params(params):
    """Host-side packing: per-kind bf16 weight slabs + one f32 aux slab of bias/LN/mask rows."""
    L = len(params["blocks"])
    qkv_w = np.zeros((L * N_HEAD * 3, N_EMBD, HEAD_DIM), np.float32)
    proj_w = np.zeros((L, N_EMBD, N_EMBD), np.float32)
    w1 = np.zeros((L, N_EMBD, 4 * N_EMBD), np.float32)
    w2 = np.zeros((L, 4 * N_EMBD, N_EMBD), np.float32)
    aux = np.zeros((L * ROWS_PER_LAYER + 1, AUX_W), np.float32)

    for l, blk in enumerate(params["blocks"]):
        aw = np.asarray(blk["attn_w"])
        ab = np.asarray(blk["attn_b"]).reshape(-1)
        base = l * ROWS_PER_LAYER
        for hd in range(N_HEAD):
            for part in range(3):                          # 0=q, 1=k, 2=v (GPT Conv1D layout)
                col0 = part * N_EMBD + hd * HEAD_DIM
                qkv_w[(l * N_HEAD + hd) * 3 + part] = aw[:, col0:col0 + HEAD_DIM]
                aux[base + R_QKVB0 + 3 * hd + part, :HEAD_DIM] = ab[col0:col0 + HEAD_DIM]
        proj_w[l] = np.asarray(blk["proj_w"])
        w1[l] = np.asarray(blk["mlp_w1"])
        w2[l] = np.asarray(blk["mlp_w2"])
        aux[base + R_PROJ_B, :N_EMBD] = np.asarray(blk["proj_b"]).reshape(-1)
        aux[base + R_LN1_G, :N_EMBD] = np.asarray(blk["ln1_g"]).reshape(-1)
        aux[base + R_LN1_B, :N_EMBD] = np.asarray(blk["ln1_b"]).reshape(-1)
        aux[base + R_MLP_B1, :4 * N_EMBD] = np.asarray(blk["mlp_b1"]).reshape(-1)
        aux[base + R_MLP_B2, :N_EMBD] = np.asarray(blk["mlp_b2"]).reshape(-1)
        aux[base + R_LN2_G, :N_EMBD] = np.asarray(blk["ln2_g"]).reshape(-1)
        aux[base + R_LN2_B, :N_EMBD] = np.asarray(blk["ln2_b"]).reshape(-1)
    aux[L * ROWS_PER_LAYER, :VOCAB] = np.asarray(params["pos_emb_mask"]).reshape(-1)

    return {
        "n_layer": L,
        "embed": jnp.asarray(params["embed"], jnp.bfloat16),
        "qkv_w": jnp.asarray(qkv_w, jnp.bfloat16),
        "proj_w": jnp.asarray(proj_w, jnp.bfloat16),
        "mlp_w1": jnp.asarray(w1, jnp.bfloat16),
        "mlp_w2": jnp.asarray(w2, jnp.bfloat16),
        "aux": jnp.asarray(aux, jnp.float32),
    }


# -------------------------------- COMET forward --------------------------------------
def comet_forward(packed, x, sequence_mask=None, return_probs=True, return_acts=False):
    """COMET.forward: h = transformer(x); lm_logits = lm_head(h) (tied weights);
    return_probs -> softmax(lm_logits + pos_emb_mask); return_acts -> logits + pos_emb_mask."""
    # TODO(synk): sequence_mask handling (original masks attn weights); only None supported.
    B, T, _ = x.shape
    N = B * T
    ids = x.reshape(N, 2).astype(jnp.int32)

    kernel = functools.partial(_comet_kernel, n_layer=packed["n_layer"],
                               return_probs=return_probs, return_acts=return_acts)
    out = _single_block_call(
        kernel, jax.ShapeDtypeStruct((N, VOCAB), jnp.float32),
        ids, _masks(B, T), packed["embed"], packed["qkv_w"], packed["proj_w"],
        packed["mlp_w1"], packed["mlp_w2"], packed["aux"])
    return out.reshape(B, T, VOCAB)


# ------------------------------------ main --------------------------------------------
if __name__ == "__main__":
    key = jax.random.PRNGKey(0)
    pkey, xkey = jax.random.split(key)
    params = init_params(pkey)
    packed = pack_params(params)

    tok = jax.random.randint(xkey, (BATCH, N_CTX), 0, VOCAB - N_CTX, dtype=jnp.int32)
    pos = (VOCAB - N_CTX) + jnp.arange(N_CTX, dtype=jnp.int32)
    x = jnp.stack([tok, jnp.broadcast_to(pos, (BATCH, N_CTX))], axis=-1)   # (B, T, 2)

    probs = comet_forward(packed, x, sequence_mask=None, return_probs=True)
    jax.block_until_ready(probs)
    assert probs.shape == (BATCH, N_CTX, VOCAB)
    assert bool(jnp.all(jnp.abs(probs.sum(-1) - 1.0) < 1e-3))   # softmax sanity
    print("KERNEL_OK")
</pallas_src>

<mosaic_0001>
module attributes {stable_mosaic.version = 11 : i64} {
  func.func @_comet_kernel(%arg0: i32, %arg1: memref<16x2xi32, #tpu.memory_space<vmem>>, %arg2: memref<2x16x16xf32, #tpu.memory_space<vmem>>, %arg3: memref<256x64xbf16, #tpu.memory_space<vmem>>, %arg4: memref<12x64x32xbf16, #tpu.memory_space<vmem>>, %arg5: memref<2x64x64xbf16, #tpu.memory_space<vmem>>, %arg6: memref<2x64x256xbf16, #tpu.memory_space<vmem>>, %arg7: memref<2x256x64xbf16, #tpu.memory_space<vmem>>, %arg8: memref<27x256xf32, #tpu.memory_space<vmem>>, %arg9: memref<16x256xf32, #tpu.memory_space<vmem>>) attributes {dimension_semantics = [#tpu.dimension_semantics<arbitrary>], iteration_bounds = array<i64: 1>, scalar_prefetch = 0 : i64, scratch_operands = 0 : i64, tpu.core_type = #tpu.core_type<tc>, window_params = [{pipeline_mode = #tpu.pipeline_mode<synchronous>, transform_indices = @transform_0, window_bounds = array<i64: 16, 2>}, {pipeline_mode = #tpu.pipeline_mode<synchronous>, transform_indices = @transform_1, window_bounds = array<i64: 2, 16, 16>}, {pipeline_mode = #tpu.pipeline_mode<synchronous>, transform_indices = @transform_2, window_bounds = array<i64: 256, 64>}, {pipeline_mode = #tpu.pipeline_mode<synchronous>, transform_indices = @transform_3, window_bounds = array<i64: 12, 64, 32>}, {pipeline_mode = #tpu.pipeline_mode<synchronous>, transform_indices = @transform_4, window_bounds = array<i64: 2, 64, 64>}, {pipeline_mode = #tpu.pipeline_mode<synchronous>, transform_indices = @transform_5, window_bounds = array<i64: 2, 64, 256>}, {pipeline_mode = #tpu.pipeline_mode<synchronous>, transform_indices = @transform_6, window_bounds = array<i64: 2, 256, 64>}, {pipeline_mode = #tpu.pipeline_mode<synchronous>, transform_indices = @transform_7, window_bounds = array<i64: 27, 256>}, {pipeline_mode = #tpu.pipeline_mode<synchronous>, transform_indices = @transform_8, window_bounds = array<i64: 16, 256>}]} {
    %c0 = arith.constant 0 : index
    %c0_0 = arith.constant 0 : index
    %0 = vector.load %arg3[%c0, %c0_0] : memref<256x64xbf16, #tpu.memory_space<vmem>>, vector<256x64xbf16>
    %c0_1 = arith.constant 0 : index
    %c0_2 = arith.constant 0 : index
    %1 = vector.load %arg1[%c0_1, %c0_2] : memref<16x2xi32, #tpu.memory_space<vmem>>, vector<16x2xi32>
    %2 = vector.extract_strided_slice %1 {offsets = [0, 0], sizes = [16, 1], strides = [1, 1]} : vector<16x2xi32> to vector<16x1xi32>
    %3 = vector.extract_strided_slice %1 {offsets = [0, 1], sizes = [16, 1], strides = [1, 1]} : vector<16x2xi32> to vector<16x1xi32>
    %4 = tpu.iota {dimensions = array<i32: 1>} : vector<16x256xi32>
    %5 = vector.broadcast %2 : vector<16x1xi32> to vector<16x256xi32>
    %6 = arith.cmpi eq, %4, %5 : vector<16x256xi32>
    %7 = arith.extui %6 : vector<16x256xi1> to vector<16x256xi32>
    %8 = arith.sitofp %7 : vector<16x256xi32> to vector<16x256xf32>
    %9 = vector.broadcast %3 : vector<16x1xi32> to vector<16x256xi32>
    %10 = arith.cmpi eq, %4, %9 : vector<16x256xi32>
    %11 = arith.extui %10 : vector<16x256xi1> to vector<16x256xi32>
    %12 = arith.sitofp %11 : vector<16x256xi32> to vector<16x256xf32>
    %13 = arith.addf %8, %12 : vector<16x256xf32>
    %14 = arith.truncf %13 : vector<16x256xf32> to vector<16x256xbf16>
    %cst = arith.constant dense<0.000000e+00> : vector<16x64xf32>
    %15 = tpu.matmul %14, %0, %cst {dimension_numbers = #tpu.dot_dimension_numbers<[1], [0], [0], [1], [0, 0, 1, 1], [], []>} : vector<16x256xbf16>, vector<256x64xbf16>, vector<16x64xf32> -> vector<16x64xf32>
    %c0_3 = arith.constant 0 : index
    %c0_4 = arith.constant 0 : index
    %c0_5 = arith.constant 0 : index
    %16 = vector.load %arg2[%c0_3, %c0_4, %c0_5] : memref<2x16x16xf32, #tpu.memory_space<vmem>>, vector<1x16x16xf32>
    %17 = vector.shape_cast %16 : vector<1x16x16xf32> to vector<16x16xf32>
    %c1 = arith.constant 1 : index
    %c0_6 = arith.constant 0 : index
    %c0_7 = arith.constant 0 : index
    %18 = vector.load %arg2[%c1, %c0_6, %c0_7] : memref<2x16x16xf32, #tpu.memory_space<vmem>>, vector<1x16x16xf32>
    %19 = vector.shape_cast %18 : vector<1x16x16xf32> to vector<16x16xf32>
    %20 = arith.truncf %15 : vector<16x64xf32> to vector<16x64xbf16>
    %c0_8 = arith.constant 0 : index
    %c0_9 = arith.constant 0 : index
    %c0_10 = arith.constant 0 : index
    %21 = vector.load %arg4[%c0_8, %c0_9, %c0_10] : memref<12x64x32xbf16, #tpu.memory_space<vmem>>, vector<1x64x32xbf16>
    %22 = vector.shape_cast %21 : vector<1x64x32xbf16> to vector<64x32xbf16>
    %cst_11 = arith.constant dense<0.000000e+00> : vector<16x32xf32>
    %23 = tpu.matmul %20, %22, %cst_11 {dimension_numbers = #tpu.dot_dimension_numbers<[1], [0], [0], [1], [0, 0, 1, 1], [], []>} : vector<16x64xbf16>, vector<64x32xbf16>, vector<16x32xf32> -> vector<16x32xf32>
    %c7 = arith.constant 7 : index
    %c0_12 = arith.constant 0 : index
    %24 = vector.load %arg8[%c7, %c0_12] : memref<27x256xf32, #tpu.memory_space<vmem>>, vector<1x32xf32>
    %25 = vector.broadcast %24 : vector<1x32xf32> to vector<16x32xf32>
    %26 = arith.addf %23, %25 : vector<16x32xf32>
    %c1_13 = arith.constant 1 : index
    %c0_14 = arith.constant 0 : index
    %c0_15 = arith.constant 0 : index
    %27 = vector.load %arg4[%c1_13, %c0_14, %c0_15] : memref<12x64x32xbf16, #tpu.memory_space<vmem>>, vector<1x64x32xbf16>
    %28 = vector.shape_cast %27 : vector<1x64x32xbf16> to vector<64x32xbf16>
    %cst_16 = arith.constant dense<0.000000e+00> : vector<16x32xf32>
    %29 = tpu.matmul %20, %28, %cst_16 {dimension_numbers = #tpu.dot_dimension_numbers<[1], [0], [0], [1], [0, 0, 1, 1], [], []>} : vector<16x64xbf16>, vector<64x32xbf16>, vector<16x32xf32> -> vector<16x32xf32>
    %c8 = arith.constant 8 : index
    %c0_17 = arith.constant 0 : index
    %30 = vector.load %arg8[%c8, %c0_17] : memref<27x256xf32, #tpu.memory_space<vmem>>, vector<1x32xf32>
    %31 = vector.broadcast %30 : vector<1x32xf32> to vector<16x32xf32>
    %32 = arith.addf %29, %31 : vector<16x32xf32>
    %c2 = arith.constant 2 : index
    %c0_18 = arith.constant 0 : index
    %c0_19 = arith.constant 0 : index
    %33 = vector.load %arg4[%c2, %c0_18, %c0_19] : memref<12x64x32xbf16, #tpu.memory_space<vmem>>, vector<1x64x32xbf16>
    %34 = vector.shape_cast %33 : vector<1x64x32xbf16> to vector<64x32xbf16>
    %cst_20 = arith.constant dense<0.000000e+00> : vector<16x32xf32>
    %35 = tpu.matmul %20, %34, %cst_20 {dimension_numbers = #tpu.dot_dimension_numbers<[1], [0], [0], [1], [0, 0, 1, 1], [], []>} : vector<16x64xbf16>, vector<64x32xbf16>, vector<16x32xf32> -> vector<16x32xf32>
    %c9 = arith.constant 9 : index
    %c0_21 = arith.constant 0 : index
    %36 = vector.load %arg8[%c9, %c0_21] : memref<27x256xf32, #tpu.memory_space<vmem>>, vector<1x32xf32>
    %37 = vector.broadcast %36 : vector<1x32xf32> to vector<16x32xf32>
    %38 = arith.addf %35, %37 : vector<16x32xf32>
    %39 = arith.truncf %26 : vector<16x32xf32> to vector<16x32xbf16>
    %40 = arith.truncf %32 : vector<16x32xf32> to vector<16x32xbf16>
    %cst_22 = arith.constant dense<0.000000e+00> : vector<16x16xf32>
    %41 = tpu.matmul %39, %40, %cst_22 {dimension_numbers = #tpu.dot_dimension_numbers<[1], [1], [0], [0], [0, 0, 1, 0], [], []>} : vector<16x32xbf16>, vector<16x32xbf16>, vector<16x16xf32> -> vector<16x16xf32>
    %cst_23 = arith.constant 0.176776692 : f32
    %42 = vector.broadcast %cst_23 : f32 to vector<16x16xf32>
    %43 = arith.mulf %41, %42 : vector<16x16xf32>
    %44 = arith.mulf %43, %17 : vector<16x16xf32>
    %45 = arith.addf %44, %19 : vector<16x16xf32>
    %cst_24 = arith.constant dense<0xFF800000> : vector<16xf32>
    %46 = vector.multi_reduction <maximumf>, %45, %cst_24 [1] : vector<16x16xf32> to vector<16xf32>
    %47 = vector.shape_cast %46 : vector<16xf32> to vector<16x1xf32>
    %48 = vector.broadcast %47 : vector<16x1xf32> to vector<16x16xf32>
    %49 = arith.subf %45, %48 : vector<16x16xf32>
    %50 = math.exp %49 : vector<16x16xf32>
    %cst_25 = arith.constant dense<0.000000e+00> : vector<16xf32>
    %51 = vector.multi_reduction <add>, %50, %cst_25 [1] : vector<16x16xf32> to vector<16xf32>
    %52 = vector.shape_cast %51 : vector<16xf32> to vector<16x1xf32>
    %53 = vector.broadcast %52 : vector<16x1xf32> to vector<16x16xf32>
    %54 = arith.divf %50, %53 : vector<16x16xf32>
    %55 = arith.truncf %54 : vector<16x16xf32> to vector<16x16xbf16>
    %56 = arith.truncf %38 : vector<16x32xf32> to vector<16x32xbf16>
    %cst_26 = arith.constant dense<0.000000e+00> : vector<16x32xf32>
    %57 = tpu.matmul %55, %56, %cst_26 {dimension_numbers = #tpu.dot_dimension_numbers<[1], [0], [0], [1], [0, 0, 1, 1], [], []>} : vector<16x16xbf16>, vector<16x32xbf16>, vector<16x32xf32> -> vector<16x32xf32>
    %c3 = arith.constant 3 : index
    %c0_27 = arith.constant 0 : index
    %c0_28 = arith.constant 0 : index
    %58 = vector.load %arg4[%c3, %c0_27, %c0_28] : memref<12x64x32xbf16, #tpu.memory_space<vmem>>, vector<1x64x32xbf16>
    %59 = vector.shape_cast %58 : vector<1x64x32xbf16> to vector<64x32xbf16>
    %cst_29 = arith.constant dense<0.000000e+00> : vector<16x32xf32>
    %60 = tpu.matmul %20, %59, %cst_29 {dimension_numbers = #tpu.dot_dimension_numbers<[1], [0], [0], [1], [0, 0, 1, 1], [], []>} : vector<16x64xbf16>, vector<64x32xbf16>, vector<16x32xf32> -> vector<16x32xf32>
    %c10 = arith.constant 10 : index
    %c0_30 = arith.constant 0 : index
    %61 = vector.load %arg8[%c10, %c0_30] : memref<27x256xf32, #tpu.memory_space<vmem>>, vector<1x32xf32>
    %62 = vector.broadcast %61 : vector<1x32xf32> to vector<16x32xf32>
    %63 = arith.addf %60, %62 : vector<16x32xf32>
    %c4 = arith.constant 4 : index
    %c0_31 = arith.constant 0 : index
    %c0_32 = arith.constant 0 : index
    %64 = vector.load %arg4[%c4, %c0_31, %c0_32] : memref<12x64x32xbf16, #tpu.memory_space<vmem>>, vector<1x64x32xbf16>
    %65 = vector.shape_cast %64 : vector<1x64x32xbf16> to vector<64x32xbf16>
    %cst_33 = arith.constant dense<0.000000e+00> : vector<16x32xf32>
    %66 = tpu.matmul %20, %65, %cst_33 {dimension_numbers = #tpu.dot_dimension_numbers<[1], [0], [0], [1], [0, 0, 1, 1], [], []>} : vector<16x64xbf16>, vector<64x32xbf16>, vector<16x32xf32> -> vector<16x32xf32>
    %c11 = arith.constant 11 : index
    %c0_34 = arith.constant 0 : index
    %67 = vector.load %arg8[%c11, %c0_34] : memref<27x256xf32, #tpu.memory_space<vmem>>, vector<1x32xf32>
    %68 = vector.broadcast %67 : vector<1x32xf32> to vector<16x32xf32>
    %69 = arith.addf %66, %68 : vector<16x32xf32>
    %c5 = arith.constant 5 : index
    %c0_35 = arith.constant 0 : index
    %c0_36 = arith.constant 0 : index
    %70 = vector.load %arg4[%c5, %c0_35, %c0_36] : memref<12x64x32xbf16, #tpu.memory_space<vmem>>, vector<1x64x32xbf16>
    %71 = vector.shape_cast %70 : vector<1x64x32xbf16> to vector<64x32xbf16>
    %cst_37 = arith.constant dense<0.000000e+00> : vector<16x32xf32>
    %72 = tpu.matmul %20, %71, %cst_37 {dimension_numbers = #tpu.dot_dimension_numbers<[1], [0], [0], [1], [0, 0, 1, 1], [], []>} : vector<16x64xbf16>, vector<64x32xbf16>, vector<16x32xf32> -> vector<16x32xf32>
    %c12 = arith.constant 12 : index
    %c0_38 = arith.constant 0 : index
    %73 = vector.load %arg8[%c12, %c0_38] : memref<27x256xf32, #tpu.memory_space<vmem>>, vector<1x32xf32>
    %74 = vector.broadcast %73 : vector<1x32xf32> to vector<16x32xf32>
    %75 = arith.addf %72, %74 : vector<16x32xf32>
    %76 = arith.truncf %63 : vector<16x32xf32> to vector<16x32xbf16>
    %77 = arith.truncf %69 : vector<16x32xf32> to vector<16x32xbf16>
    %cst_39 = arith.constant dense<0.000000e+00> : vector<16x16xf32>
    %78 = tpu.matmul %76, %77, %cst_39 {dimension_numbers = #tpu.dot_dimension_numbers<[1], [1], [0], [0], [0, 0, 1, 0], [], []>} : vector<16x32xbf16>, vector<16x32xbf16>, vector<16x16xf32> -> vector<16x16xf32>
    %cst_40 = arith.constant 0.176776692 : f32
    %79 = vector.broadcast %cst_40 : f32 to vector<16x16xf32>
    %80 = arith.mulf %78, %79 : vector<16x16xf32>
    %81 = arith.mulf %80, %17 : vector<16x16xf32>
    %82 = arith.addf %81, %19 : vector<16x16xf32>
    %cst_41 = arith.constant dense<0xFF800000> : vector<16xf32>
    %83 = vector.multi_reduction <maximumf>, %82, %cst_41 [1] : vector<16x16xf32> to vector<16xf32>
    %84 = vector.shape_cast %83 : vector<16xf32> to vector<16x1xf32>
    %85 = vector.broadcast %84 : vector<16x1xf32> to vector<16x16xf32>
    %86 = arith.subf %82, %85 : vector<16x16xf32>
    %87 = math.exp %86 : vector<16x16xf32>
    %cst_42 = arith.constant dense<0.000000e+00> : vector<16xf32>
    %88 = vector.multi_reduction <add>, %87, %cst_42 [1] : vector<16x16xf32> to vector<16xf32>
    %89 = vector.shape_cast %88 : vector<16xf32> to vector<16x1xf32>
    %90 = vector.broadcast %89 : vector<16x1xf32> to vector<16x16xf32>
    %91 = arith.divf %87, %90 : vector<16x16xf32>
    %92 = arith.truncf %91 : vector<16x16xf32> to vector<16x16xbf16>
    %93 = arith.truncf %75 : vector<16x32xf32> to vector<16x32xbf16>
    %cst_43 = arith.constant dense<0.000000e+00> : vector<16x32xf32>
    %94 = tpu.matmul %92, %93, %cst_43 {dimension_numbers = #tpu.dot_dimension_numbers<[1], [0], [0], [1], [0, 0, 1, 1], [], []>} : vector<16x16xbf16>, vector<16x32xbf16>, vector<16x32xf32> -> vector<16x32xf32>
    %95 = tpu.concatenate %57, %94 in 1 : vector<16x32xf32>, vector<16x32xf32> -> vector<16x64xf32>
    %96 = arith.truncf %95 : vector<16x64xf32> to vector<16x64xbf16>
    %c0_44 = arith.constant 0 : index
    %c0_45 = arith.constant 0 : index
    %c0_46 = arith.constant 0 : index
    %97 = vector.load %arg5[%c0_44, %c0_45, %c0_46] : memref<2x64x64xbf16, #tpu.memory_space<vmem>>, vector<1x64x64xbf16>
    %98 = vector.shape_cast %97 : vector<1x64x64xbf16> to vector<64x64xbf16>
    %cst_47 = arith.constant dense<0.000000e+00> : vector<16x64xf32>
    %99 = tpu.matmul %96, %98, %cst_47 {dimension_numbers = #tpu.dot_dimension_numbers<[1], [0], [0], [1], [0, 0, 1, 1], [], []>} : vector<16x64xbf16>, vector<64x64xbf16>, vector<16x64xf32> -> vector<16x64xf32>
    %c0_48 = arith.constant 0 : index
    %c0_49 = arith.constant 0 : index
    %100 = vector.load %arg8[%c0_48, %c0_49] : memref<27x256xf32, #tpu.memory_space<vmem>>, vector<1x64xf32>
    %101 = vector.broadcast %100 : vector<1x64xf32> to vector<16x64xf32>
    %102 = arith.addf %99, %101 : vector<16x64xf32>
    %103 = arith.addf %15, %102 : vector<16x64xf32>
    %c1_50 = arith.constant 1 : index
    %c0_51 = arith.constant 0 : index
    %104 = vector.load %arg8[%c1_50, %c0_51] : memref<27x256xf32, #tpu.memory_space<vmem>>, vector<1x64xf32>
    %c2_52 = arith.constant 2 : index
    %c0_53 = arith.constant 0 : index
    %105 = vector.load %arg8[%c2_52, %c0_53] : memref<27x256xf32, #tpu.memory_space<vmem>>, vector<1x64xf32>
    %cst_54 = arith.constant dense<0.000000e+00> : vector<16xf32>
    %106 = vector.multi_reduction <add>, %103, %cst_54 [1] : vector<16x64xf32> to vector<16xf32>
    %107 = vector.shape_cast %106 : vector<16xf32> to vector<16x1xf32>
    %cst_55 = arith.constant 6.400000e+01 : f32
    %108 = vector.broadcast %cst_55 : f32 to vector<16x1xf32>
    %109 = arith.divf %107, %108 : vector<16x1xf32>
    %110 = vector.broadcast %109 : vector<16x1xf32> to vector<16x64xf32>
    %111 = arith.subf %103, %110 : vector<16x64xf32>
    %112 = arith.mulf %111, %111 : vector<16x64xf32>
    %cst_56 = arith.constant dense<0.000000e+00> : vector<16xf32>
    %113 = vector.multi_reduction <add>, %112, %cst_56 [1] : vector<16x64xf32> to vector<16xf32>
    %114 = vector.shape_cast %113 : vector<16xf32> to vector<16x1xf32>
    %cst_57 = arith.constant 6.400000e+01 : f32
    %115 = vector.broadcast %cst_57 : f32 to vector<16x1xf32>
    %116 = arith.divf %114, %115 : vector<16x1xf32>
    %117 = vector.broadcast %109 : vector<16x1xf32> to vector<16x64xf32>
    %118 = arith.subf %103, %117 : vector<16x64xf32>
    %cst_58 = arith.constant 9.99999974E-6 : f32
    %119 = vector.broadcast %cst_58 : f32 to vector<16x1xf32>
    %120 = arith.addf %116, %119 : vector<16x1xf32>
    %121 = math.rsqrt %120 : vector<16x1xf32>
    %122 = vector.broadcast %121 : vector<16x1xf32> to vector<16x64xf32>
    %123 = arith.mulf %118, %122 : vector<16x64xf32>
    %124 = vector.broadcast %104 : vector<1x64xf32> to vector<16x64xf32>
    %125 = arith.mulf %123, %124 : vector<16x64xf32>
    %126 = vector.broadcast %105 : vector<1x64xf32> to vector<16x64xf32>
    %127 = arith.addf %125, %126 : vector<16x64xf32>
    %128 = arith.truncf %127 : vector<16x64xf32> to vector<16x64xbf16>
    %c0_59 = arith.constant 0 : index
    %c0_60 = arith.constant 0 : index
    %c0_61 = arith.constant 0 : index
    %129 = vector.load %arg6[%c0_59, %c0_60, %c0_61] : memref<2x64x256xbf16, #tpu.memory_space<vmem>>, vector<1x64x256xbf16>
    %130 = vector.shape_cast %129 : vector<1x64x256xbf16> to vector<64x256xbf16>
    %cst_62 = arith.constant dense<0.000000e+00> : vector<16x256xf32>
    %131 = tpu.matmul %128, %130, %cst_62 {dimension_numbers = #tpu.dot_dimension_numbers<[1], [0], [0], [1], [0, 0, 1, 1], [], []>} : vector<16x64xbf16>, vector<64x256xbf16>, vector<16x256xf32> -> vector<16x256xf32>
    %c6 = arith.constant 6 : index
    %c0_63 = arith.constant 0 : index
    %132 = vector.load %arg8[%c6, %c0_63] : memref<27x256xf32, #tpu.memory_space<vmem>>, vector<1x256xf32>
    %133 = vector.broadcast %132 : vector<1x256xf32> to vector<16x256xf32>
    %134 = arith.addf %131, %133 : vector<16x256xf32>
    %cst_64 = arith.constant 5.000000e-01 : f32
    %135 = vector.broadcast %cst_64 : f32 to vector<16x256xf32>
    %136 = arith.mulf %135, %134 : vector<16x256xf32>
    %cst_65 = arith.constant 4.471500e-02 : f32
    %137 = vector.broadcast %cst_65 : f32 to vector<16x256xf32>
    %138 = arith.mulf %137, %134 : vector<16x256xf32>
    %139 = arith.mulf %138, %134 : vector<16x256xf32>
    %140 = arith.mulf %139, %134 : vector<16x256xf32>
    %141 = arith.addf %134, %140 : vector<16x256xf32>
    %cst_66 = arith.constant 0.797884583 : f32
    %142 = vector.broadcast %cst_66 : f32 to vector<16x256xf32>
    %143 = arith.mulf %142, %141 : vector<16x256xf32>
    %144 = math.tanh %143 : vector<16x256xf32>
    %cst_67 = arith.constant 1.000000e+00 : f32
    %145 = vector.broadcast %cst_67 : f32 to vector<16x256xf32>
    %146 = arith.addf %145, %144 : vector<16x256xf32>
    %147 = arith.mulf %136, %146 : vector<16x256xf32>
    %148 = arith.truncf %147 : vector<16x256xf32> to vector<16x256xbf16>
    %c0_68 = arith.constant 0 : index
    %c0_69 = arith.constant 0 : index
    %c0_70 = arith.constant 0 : index
    %149 = vector.load %arg7[%c0_68, %c0_69, %c0_70] : memref<2x256x64xbf16, #tpu.memory_space<vmem>>, vector<1x256x64xbf16>
    %150 = vector.shape_cast %149 : vector<1x256x64xbf16> to vector<256x64xbf16>
    %cst_71 = arith.constant dense<0.000000e+00> : vector<16x64xf32>
    %151 = tpu.matmul %148, %150, %cst_71 {dimension_numbers = #tpu.dot_dimension_numbers<[1], [0], [0], [1], [0, 0, 1, 1], [], []>} : vector<16x256xbf16>, vector<256x64xbf16>, vector<16x64xf32> -> vector<16x64xf32>
    %c3_72 = arith.constant 3 : index
    %c0_73 = arith.constant 0 : index
    %152 = vector.load %arg8[%c3_72, %c0_73] : memref<27x256xf32, #tpu.memory_space<vmem>>, vector<1x64xf32>
    %153 = vector.broadcast %152 : vector<1x64xf32> to vector<16x64xf32>
    %154 = arith.addf %151, %153 : vector<16x64xf32>
    %155 = arith.addf %127, %154 : vector<16x64xf32>
    %c4_74 = arith.constant 4 : index
    %c0_75 = arith.constant 0 : index
    %156 = vector.load %arg8[%c4_74, %c0_75] : memref<27x256xf32, #tpu.memory_space<vmem>>, vector<1x64xf32>
    %c5_76 = arith.constant 5 : index
    %c0_77 = arith.constant 0 : index
    %157 = vector.load %arg8[%c5_76, %c0_77] : memref<27x256xf32, #tpu.memory_space<vmem>>, vector<1x64xf32>
    %cst_78 = arith.constant dense<0.000000e+00> : vector<16xf32>
    %158 = vector.multi_reduction <add>, %155, %cst_78 [1] : vector<16x64xf32> to vector<16xf32>
    %159 = vector.shape_cast %158 : vector<16xf32> to vector<16x1xf32>
    %cst_79 = arith.constant 6.400000e+01 : f32
    %160 = vector.broadcast %cst_79 : f32 to vector<16x1xf32>
    %161 = arith.divf %159, %160 : vector<16x1xf32>
    %162 = vector.broadcast %161 : vector<16x1xf32> to vector<16x64xf32>
    %163 = arith.subf %155, %162 : vector<16x64xf32>
    %164 = arith.mulf %163, %163 : vector<16x64xf32>
    %cst_80 = arith.constant dense<0.000000e+00> : vector<16xf32>
    %165 = vector.multi_reduction <add>, %164, %cst_80 [1] : vector<16x64xf32> to vector<16xf32>
    %166 = vector.shape_cast %165 : vector<16xf32> to vector<16x1xf32>
    %cst_81 = arith.constant 6.400000e+01 : f32
    %167 = vector.broadcast %cst_81 : f32 to vector<16x1xf32>
    %168 = arith.divf %166, %167 : vector<16x1xf32>
    %169 = vector.broadcast %161 : vector<16x1xf32> to vector<16x64xf32>
    %170 = arith.subf %155, %169 : vector<16x64xf32>
    %cst_82 = arith.constant 9.99999974E-6 : f32
    %171 = vector.broadcast %cst_82 : f32 to vector<16x1xf32>
    %172 = arith.addf %168, %171 : vector<16x1xf32>
    %173 = math.rsqrt %172 : vector<16x1xf32>
    %174 = vector.broadcast %173 : vector<16x1xf32> to vector<16x64xf32>
    %175 = arith.mulf %170, %174 : vector<16x64xf32>
    %176 = vector.broadcast %156 : vector<1x64xf32> to vector<16x64xf32>
    %177 = arith.mulf %175, %176 : vector<16x64xf32>
    %178 = vector.broadcast %157 : vector<1x64xf32> to vector<16x64xf32>
    %179 = arith.addf %177, %178 : vector<16x64xf32>
    %180 = arith.truncf %179 : vector<16x64xf32> to vector<16x64xbf16>
    %c6_83 = arith.constant 6 : index
    %c0_84 = arith.constant 0 : index
    %c0_85 = arith.constant 0 : index
    %181 = vector.load %arg4[%c6_83, %c0_84, %c0_85] : memref<12x64x32xbf16, #tpu.memory_space<vmem>>, vector<1x64x32xbf16>
    %182 = vector.shape_cast %181 : vector<1x64x32xbf16> to vector<64x32xbf16>
    %cst_86 = arith.constant dense<0.000000e+00> : vector<16x32xf32>
    %183 = tpu.matmul %180, %182, %cst_86 {dimension_numbers = #tpu.dot_dimension_numbers<[1], [0], [0], [1], [0, 0, 1, 1], [], []>} : vector<16x64xbf16>, vector<64x32xbf16>, vector<16x32xf32> -> vector<16x32xf32>
    %c20 = arith.constant 20 : index
    %c0_87 = arith.constant 0 : index
    %184 = vector.load %arg8[%c20, %c0_87] : memref<27x256xf32, #tpu.memory_space<vmem>>, vector<1x32xf32>
    %185 = vector.broadcast %184 : vector<1x32xf32> to vector<16x32xf32>
    %186 = arith.addf %183, %185 : vector<16x32xf32>
    %c7_88 = arith.constant 7 : index
    %c0_89 = arith.constant 0 : index
    %c0_90 = arith.constant 0 : index
    %187 = vector.load %arg4[%c7_88, %c0_89, %c0_90] : memref<12x64x32xbf16, #tpu.memory_space<vmem>>, vector<1x64x32xbf16>
    %188 = vector.shape_cast %187 : vector<1x64x32xbf16> to vector<64x32xbf16>
    %cst_91 = arith.constant dense<0.000000e+00> : vector<16x32xf32>
    %189 = tpu.matmul %180, %188, %cst_91 {dimension_numbers = #tpu.dot_dimension_numbers<[1], [0], [0], [1], [0, 0, 1, 1], [], []>} : vector<16x64xbf16>, vector<64x32xbf16>, vector<16x32xf32> -> vector<16x32xf32>
    %c21 = arith.constant 21 : index
    %c0_92 = arith.constant 0 : index
    %190 = vector.load %arg8[%c21, %c0_92] : memref<27x256xf32, #tpu.memory_space<vmem>>, vector<1x32xf32>
    %191 = vector.broadcast %190 : vector<1x32xf32> to vector<16x32xf32>
    %192 = arith.addf %189, %191 : vector<16x32xf32>
    %c8_93 = arith.constant 8 : index
    %c0_94 = arith.constant 0 : index
    %c0_95 = arith.constant 0 : index
    %193 = vector.load %arg4[%c8_93, %c0_94, %c0_95] : memref<12x64x32xbf16, #tpu.memory_space<vmem>>, vector<1x64x32xbf16>
    %194 = vector.shape_cast %193 : vector<1x64x32xbf16> to vector<64x32xbf16>
    %cst_96 = arith.constant dense<0.000000e+00> : vector<16x32xf32>
    %195 = tpu.matmul %180, %194, %cst_96 {dimension_numbers = #tpu.dot_dimension_numbers<[1], [0], [0], [1], [0, 0, 1, 1], [], []>} : vector<16x64xbf16>, vector<64x32xbf16>, vector<16x32xf32> -> vector<16x32xf32>
    %c22 = arith.constant 22 : index
    %c0_97 = arith.constant 0 : index
    %196 = vector.load %arg8[%c22, %c0_97] : memref<27x256xf32, #tpu.memory_space<vmem>>, vector<1x32xf32>
    %197 = vector.broadcast %196 : vector<1x32xf32> to vector<16x32xf32>
    %198 = arith.addf %195, %197 : vector<16x32xf32>
    %199 = arith.truncf %186 : vector<16x32xf32> to vector<16x32xbf16>
    %200 = arith.truncf %192 : vector<16x32xf32> to vector<16x32xbf16>
    %cst_98 = arith.constant dense<0.000000e+00> : vector<16x16xf32>
    %201 = tpu.matmul %199, %200, %cst_98 {dimension_numbers = #tpu.dot_dimension_numbers<[1], [1], [0], [0], [0, 0, 1, 0], [], []>} : vector<16x32xbf16>, vector<16x32xbf16>, vector<16x16xf32> -> vector<16x16xf32>
    %cst_99 = arith.constant 0.176776692 : f32
    %202 = vector.broadcast %cst_99 : f32 to vector<16x16xf32>
    %203 = arith.mulf %201, %202 : vector<16x16xf32>
    %204 = arith.mulf %203, %17 : vector<16x16xf32>
    %205 = arith.addf %204, %19 : vector<16x16xf32>
    %cst_100 = arith.constant dense<0xFF800000> : vector<16xf32>
    %206 = vector.multi_reduction <maximumf>, %205, %cst_100 [1] : vector<16x16xf32> to vector<16xf32>
    %207 = vector.shape_cast %206 : vector<16xf32> to vector<16x1xf32>
    %208 = vector.broadcast %207 : vector<16x1xf32> to vector<16x16xf32>
    %209 = arith.subf %205, %208 : vector<16x16xf32>
    %210 = math.exp %209 : vector<16x16xf32>
    %cst_101 = arith.constant dense<0.000000e+00> : vector<16xf32>
    %211 = vector.multi_reduction <add>, %210, %cst_101 [1] : vector<16x16xf32> to vector<16xf32>
    %212 = vector.shape_cast %211 : vector<16xf32> to vector<16x1xf32>
    %213 = vector.broadcast %212 : vector<16x1xf32> to vector<16x16xf32>
    %214 = arith.divf %210, %213 : vector<16x16xf32>
    %215 = arith.truncf %214 : vector<16x16xf32> to vector<16x16xbf16>
    %216 = arith.truncf %198 : vector<16x32xf32> to vector<16x32xbf16>
    %cst_102 = arith.constant dense<0.000000e+00> : vector<16x32xf32>
    %217 = tpu.matmul %215, %216, %cst_102 {dimension_numbers = #tpu.dot_dimension_numbers<[1], [0], [0], [1], [0, 0, 1, 1], [], []>} : vector<16x16xbf16>, vector<16x32xbf16>, vector<16x32xf32> -> vector<16x32xf32>
    %c9_103 = arith.constant 9 : index
    %c0_104 = arith.constant 0 : index
    %c0_105 = arith.constant 0 : index
    %218 = vector.load %arg4[%c9_103, %c0_104, %c0_105] : memref<12x64x32xbf16, #tpu.memory_space<vmem>>, vector<1x64x32xbf16>
    %219 = vector.shape_cast %218 : vector<1x64x32xbf16> to vector<64x32xbf16>
    %cst_106 = arith.constant dense<0.000000e+00> : vector<16x32xf32>
    %220 = tpu.matmul %180, %219, %cst_106 {dimension_numbers = #tpu.dot_dimension_numbers<[1], [0], [0], [1], [0, 0, 1, 1], [], []>} : vector<16x64xbf16>, vector<64x32xbf16>, vector<16x32xf32> -> vector<16x32xf32>
    %c23 = arith.constant 23 : index
    %c0_107 = arith.constant 0 : index
    %221 = vector.load %arg8[%c23, %c0_107] : memref<27x256xf32, #tpu.memory_space<vmem>>, vector<1x32xf32>
    %222 = vector.broadcast %221 : vector<1x32xf32> to vector<16x32xf32>
    %223 = arith.addf %220, %222 : vector<16x32xf32>
    %c10_108 = arith.constant 10 : index
    %c0_109 = arith.constant 0 : index
    %c0_110 = arith.constant 0 : index
    %224 = vector.load %arg4[%c10_108, %c0_109, %c0_110] : memref<12x64x32xbf16, #tpu.memory_space<vmem>>, vector<1x64x32xbf16>
    %225 = vector.shape_cast %224 : vector<1x64x32xbf16> to vector<64x32xbf16>
    %cst_111 = arith.constant dense<0.000000e+00> : vector<16x32xf32>
    %226 = tpu.matmul %180, %225, %cst_111 {dimension_numbers = #tpu.dot_dimension_numbers<[1], [0], [0], [1], [0, 0, 1, 1], [], []>} : vector<16x64xbf16>, vector<64x32xbf16>, vector<16x32xf32> -> vector<16x32xf32>
    %c24 = arith.constant 24 : index
    %c0_112 = arith.constant 0 : index
    %227 = vector.load %arg8[%c24, %c0_112] : memref<27x256xf32, #tpu.memory_space<vmem>>, vector<1x32xf32>
    %228 = vector.broadcast %227 : vector<1x32xf32> to vector<16x32xf32>
    %229 = arith.addf %226, %228 : vector<16x32xf32>
    %c11_113 = arith.constant 11 : index
    %c0_114 = arith.constant 0 : index
    %c0_115 = arith.constant 0 : index
    %230 = vector.load %arg4[%c11_113, %c0_114, %c0_115] : memref<12x64x32xbf16, #tpu.memory_space<vmem>>, vector<1x64x32xbf16>
    %231 = vector.shape_cast %230 : vector<1x64x32xbf16> to vector<64x32xbf16>
    %cst_116 = arith.constant dense<0.000000e+00> : vector<16x32xf32>
    %232 = tpu.matmul %180, %231, %cst_116 {dimension_numbers = #tpu.dot_dimension_numbers<[1], [0], [0], [1], [0, 0, 1, 1], [], []>} : vector<16x64xbf16>, vector<64x32xbf16>, vector<16x32xf32> -> vector<16x32xf32>
    %c25 = arith.constant 25 : index
    %c0_117 = arith.constant 0 : index
    %233 = vector.load %arg8[%c25, %c0_117] : memref<27x256xf32, #tpu.memory_space<vmem>>, vector<1x32xf32>
    %234 = vector.broadcast %233 : vector<1x32xf32> to vector<16x32xf32>
    %235 = arith.addf %232, %234 : vector<16x32xf32>
    %236 = arith.truncf %223 : vector<16x32xf32> to vector<16x32xbf16>
    %237 = arith.truncf %229 : vector<16x32xf32> to vector<16x32xbf16>
    %cst_118 = arith.constant dense<0.000000e+00> : vector<16x16xf32>
    %238 = tpu.matmul %236, %237, %cst_118 {dimension_numbers = #tpu.dot_dimension_numbers<[1], [1], [0], [0], [0, 0, 1, 0], [], []>} : vector<16x32xbf16>, vector<16x32xbf16>, vector<16x16xf32> -> vector<16x16xf32>
    %cst_119 = arith.constant 0.176776692 : f32
    %239 = vector.broadcast %cst_119 : f32 to vector<16x16xf32>
    %240 = arith.mulf %238, %239 : vector<16x16xf32>
    %241 = arith.mulf %240, %17 : vector<16x16xf32>
    %242 = arith.addf %241, %19 : vector<16x16xf32>
    %cst_120 = arith.constant dense<0xFF800000> : vector<16xf32>
    %243 = vector.multi_reduction <maximumf>, %242, %cst_120 [1] : vector<16x16xf32> to vector<16xf32>
    %244 = vector.shape_cast %243 : vector<16xf32> to vector<16x1xf32>
    %245 = vector.broadcast %244 : vector<16x1xf32> to vector<16x16xf32>
    %246 = arith.subf %242, %245 : vector<16x16xf32>
    %247 = math.exp %246 : vector<16x16xf32>
    %cst_121 = arith.constant dense<0.000000e+00> : vector<16xf32>
    %248 = vector.multi_reduction <add>, %247, %cst_121 [1] : vector<16x16xf32> to vector<16xf32>
    %249 = vector.shape_cast %248 : vector<16xf32> to vector<16x1xf32>
    %250 = vector.broadcast %249 : vector<16x1xf32> to vector<16x16xf32>
    %251 = arith.divf %247, %250 : vector<16x16xf32>
    %252 = arith.truncf %251 : vector<16x16xf32> to vector<16x16xbf16>
    %253 = arith.truncf %235 : vector<16x32xf32> to vector<16x32xbf16>
    %cst_122 = arith.constant dense<0.000000e+00> : vector<16x32xf32>
    %254 = tpu.matmul %252, %253, %cst_122 {dimension_numbers = #tpu.dot_dimension_numbers<[1], [0], [0], [1], [0, 0, 1, 1], [], []>} : vector<16x16xbf16>, vector<16x32xbf16>, vector<16x32xf32> -> vector<16x32xf32>
    %255 = tpu.concatenate %217, %254 in 1 : vector<16x32xf32>, vector<16x32xf32> -> vector<16x64xf32>
    %256 = arith.truncf %255 : vector<16x64xf32> to vector<16x64xbf16>
    %c1_123 = arith.constant 1 : index
    %c0_124 = arith.constant 0 : index
    %c0_125 = arith.constant 0 : index
    %257 = vector.load %arg5[%c1_123, %c0_124, %c0_125] : memref<2x64x64xbf16, #tpu.memory_space<vmem>>, vector<1x64x64xbf16>
    %258 = vector.shape_cast %257 : vector<1x64x64xbf16> to vector<64x64xbf16>
    %cst_126 = arith.constant dense<0.000000e+00> : vector<16x64xf32>
    %259 = tpu.matmul %256, %258, %cst_126 {dimension_numbers = #tpu.dot_dimension_numbers<[1], [0], [0], [1], [0, 0, 1, 1], [], []>} : vector<16x64xbf16>, vector<64x64xbf16>, vector<16x64xf32> -> vector<16x64xf32>
    %c13 = arith.constant 13 : index
    %c0_127 = arith.constant 0 : index
    %260 = vector.load %arg8[%c13, %c0_127] : memref<27x256xf32, #tpu.memory_space<vmem>>, vector<1x64xf32>
    %261 = vector.broadcast %260 : vector<1x64xf32> to vector<16x64xf32>
    %262 = arith.addf %259, %261 : vector<16x64xf32>
    %263 = arith.addf %179, %262 : vector<16x64xf32>
    %c14 = arith.constant 14 : index
    %c0_128 = arith.constant 0 : index
    %264 = vector.load %arg8[%c14, %c0_128] : memref<27x256xf32, #tpu.memory_space<vmem>>, vector<1x64xf32>
    %c15 = arith.constant 15 : index
    %c0_129 = arith.constant 0 : index
    %265 = vector.load %arg8[%c15, %c0_129] : memref<27x256xf32, #tpu.memory_space<vmem>>, vector<1x64xf32>
    %cst_130 = arith.constant dense<0.000000e+00> : vector<16xf32>
    %266 = vector.multi_reduction <add>, %263, %cst_130 [1] : vector<16x64xf32> to vector<16xf32>
    %267 = vector.shape_cast %266 : vector<16xf32> to vector<16x1xf32>
    %cst_131 = arith.constant 6.400000e+01 : f32
    %268 = vector.broadcast %cst_131 : f32 to vector<16x1xf32>
    %269 = arith.divf %267, %268 : vector<16x1xf32>
    %270 = vector.broadcast %269 : vector<16x1xf32> to vector<16x64xf32>
    %271 = arith.subf %263, %270 : vector<16x64xf32>
    %272 = arith.mulf %271, %271 : vector<16x64xf32>
    %cst_132 = arith.constant dense<0.000000e+00> : vector<16xf32>
    %273 = vector.multi_reduction <add>, %272, %cst_132 [1] : vector<16x64xf32> to vector<16xf32>
    %274 = vector.shape_cast %273 : vector<16xf32> to vector<16x1xf32>
    %cst_133 = arith.constant 6.400000e+01 : f32
    %275 = vector.broadcast %cst_133 : f32 to vector<16x1xf32>
    %276 = arith.divf %274, %275 : vector<16x1xf32>
    %277 = vector.broadcast %269 : vector<16x1xf32> to vector<16x64xf32>
    %278 = arith.subf %263, %277 : vector<16x64xf32>
    %cst_134 = arith.constant 9.99999974E-6 : f32
    %279 = vector.broadcast %cst_134 : f32 to vector<16x1xf32>
    %280 = arith.addf %276, %279 : vector<16x1xf32>
    %281 = math.rsqrt %280 : vector<16x1xf32>
    %282 = vector.broadcast %281 : vector<16x1xf32> to vector<16x64xf32>
    %283 = arith.mulf %278, %282 : vector<16x64xf32>
    %284 = vector.broadcast %264 : vector<1x64xf32> to vector<16x64xf32>
    %285 = arith.mulf %283, %284 : vector<16x64xf32>
    %286 = vector.broadcast %265 : vector<1x64xf32> to vector<16x64xf32>
    %287 = arith.addf %285, %286 : vector<16x64xf32>
    %288 = arith.truncf %287 : vector<16x64xf32> to vector<16x64xbf16>
    %c1_135 = arith.constant 1 : index
    %c0_136 = arith.constant 0 : index
    %c0_137 = arith.constant 0 : index
    %289 = vector.load %arg6[%c1_135, %c0_136, %c0_137] : memref<2x64x256xbf16, #tpu.memory_space<vmem>>, vector<1x64x256xbf16>
    %290 = vector.shape_cast %289 : vector<1x64x256xbf16> to vector<64x256xbf16>
    %cst_138 = arith.constant dense<0.000000e+00> : vector<16x256xf32>
    %291 = tpu.matmul %288, %290, %cst_138 {dimension_numbers = #tpu.dot_dimension_numbers<[1], [0], [0], [1], [0, 0, 1, 1], [], []>} : vector<16x64xbf16>, vector<64x256xbf16>, vector<16x256xf32> -> vector<16x256xf32>
    %c19 = arith.constant 19 : index
    %c0_139 = arith.constant 0 : index
    %292 = vector.load %arg8[%c19, %c0_139] : memref<27x256xf32, #tpu.memory_space<vmem>>, vector<1x256xf32>
    %293 = vector.broadcast %292 : vector<1x256xf32> to vector<16x256xf32>
    %294 = arith.addf %291, %293 : vector<16x256xf32>
    %cst_140 = arith.constant 5.000000e-01 : f32
    %295 = vector.broadcast %cst_140 : f32 to vector<16x256xf32>
    %296 = arith.mulf %295, %294 : vector<16x256xf32>
    %cst_141 = arith.constant 4.471500e-02 : f32
    %297 = vector.broadcast %cst_141 : f32 to vector<16x256xf32>
    %298 = arith.mulf %297, %294 : vector<16x256xf32>
    %299 = arith.mulf %298, %294 : vector<16x256xf32>
    %300 = arith.mulf %299, %294 : vector<16x256xf32>
    %301 = arith.addf %294, %300 : vector<16x256xf32>
    %cst_142 = arith.constant 0.797884583 : f32
    %302 = vector.broadcast %cst_142 : f32 to vector<16x256xf32>
    %303 = arith.mulf %302, %301 : vector<16x256xf32>
    %304 = math.tanh %303 : vector<16x256xf32>
    %cst_143 = arith.constant 1.000000e+00 : f32
    %305 = vector.broadcast %cst_143 : f32 to vector<16x256xf32>
    %306 = arith.addf %305, %304 : vector<16x256xf32>
    %307 = arith.mulf %296, %306 : vector<16x256xf32>
    %308 = arith.truncf %307 : vector<16x256xf32> to vector<16x256xbf16>
    %c1_144 = arith.constant 1 : index
    %c0_145 = arith.constant 0 : index
    %c0_146 = arith.constant 0 : index
    %309 = vector.load %arg7[%c1_144, %c0_145, %c0_146] : memref<2x256x64xbf16, #tpu.memory_space<vmem>>, vector<1x256x64xbf16>
    %310 = vector.shape_cast %309 : vector<1x256x64xbf16> to vector<256x64xbf16>
    %cst_147 = arith.constant dense<0.000000e+00> : vector<16x64xf32>
    %311 = tpu.matmul %308, %310, %cst_147 {dimension_numbers = #tpu.dot_dimension_numbers<[1], [0], [0], [1], [0, 0, 1, 1], [], []>} : vector<16x256xbf16>, vector<256x64xbf16>, vector<16x64xf32> -> vector<16x64xf32>
    %c16 = arith.constant 16 : index
    %c0_148 = arith.constant 0 : index
    %312 = vector.load %arg8[%c16, %c0_148] : memref<27x256xf32, #tpu.memory_space<vmem>>, vector<1x64xf32>
    %313 = vector.broadcast %312 : vector<1x64xf32> to vector<16x64xf32>
    %314 = arith.addf %311, %313 : vector<16x64xf32>
    %315 = arith.addf %287, %314 : vector<16x64xf32>
    %c17 = arith.constant 17 : index
    %c0_149 = arith.constant 0 : index
    %316 = vector.load %arg8[%c17, %c0_149] : memref<27x256xf32, #tpu.memory_space<vmem>>, vector<1x64xf32>
    %c18 = arith.constant 18 : index
    %c0_150 = arith.constant 0 : index
    %317 = vector.load %arg8[%c18, %c0_150] : memref<27x256xf32, #tpu.memory_space<vmem>>, vector<1x64xf32>
    %cst_151 = arith.constant dense<0.000000e+00> : vector<16xf32>
    %318 = vector.multi_reduction <add>, %315, %cst_151 [1] : vector<16x64xf32> to vector<16xf32>
    %319 = vector.shape_cast %318 : vector<16xf32> to vector<16x1xf32>
    %cst_152 = arith.constant 6.400000e+01 : f32
    %320 = vector.broadcast %cst_152 : f32 to vector<16x1xf32>
    %321 = arith.divf %319, %320 : vector<16x1xf32>
    %322 = vector.broadcast %321 : vector<16x1xf32> to vector<16x64xf32>
    %323 = arith.subf %315, %322 : vector<16x64xf32>
    %324 = arith.mulf %323, %323 : vector<16x64xf32>
    %cst_153 = arith.constant dense<0.000000e+00> : vector<16xf32>
    %325 = vector.multi_reduction <add>, %324, %cst_153 [1] : vector<16x64xf32> to vector<16xf32>
    %326 = vector.shape_cast %325 : vector<16xf32> to vector<16x1xf32>
    %cst_154 = arith.constant 6.400000e+01 : f32
    %327 = vector.broadcast %cst_154 : f32 to vector<16x1xf32>
    %328 = arith.divf %326, %327 : vector<16x1xf32>
    %329 = vector.broadcast %321 : vector<16x1xf32> to vector<16x64xf32>
    %330 = arith.subf %315, %329 : vector<16x64xf32>
    %cst_155 = arith.constant 9.99999974E-6 : f32
    %331 = vector.broadcast %cst_155 : f32 to vector<16x1xf32>
    %332 = arith.addf %328, %331 : vector<16x1xf32>
    %333 = math.rsqrt %332 : vector<16x1xf32>
    %334 = vector.broadcast %333 : vector<16x1xf32> to vector<16x64xf32>
    %335 = arith.mulf %330, %334 : vector<16x64xf32>
    %336 = vector.broadcast %316 : vector<1x64xf32> to vector<16x64xf32>
    %337 = arith.mulf %335, %336 : vector<16x64xf32>
    %338 = vector.broadcast %317 : vector<1x64xf32> to vector<16x64xf32>
    %339 = arith.addf %337, %338 : vector<16x64xf32>
    %340 = arith.truncf %339 : vector<16x64xf32> to vector<16x64xbf16>
    %cst_156 = arith.constant dense<0.000000e+00> : vector<16x256xf32>
    %341 = tpu.matmul %340, %0, %cst_156 {dimension_numbers = #tpu.dot_dimension_numbers<[1], [1], [0], [0], [0, 0, 1, 0], [], []>} : vector<16x64xbf16>, vector<256x64xbf16>, vector<16x256xf32> -> vector<16x256xf32>
    %c26 = arith.constant 26 : index
    %c0_157 = arith.constant 0 : index
    %342 = vector.load %arg8[%c26, %c0_157] : memref<27x256xf32, #tpu.memory_space<vmem>>, vector<1x256xf32>
    %343 = vector.broadcast %342 : vector<1x256xf32> to vector<16x256xf32>
    %344 = arith.addf %341, %343 : vector<16x256xf32>
    %cst_158 = arith.constant dense<0xFF800000> : vector<16xf32>
    %345 = vector.multi_reduction <maximumf>, %344, %cst_158 [1] : vector<16x256xf32> to vector<16xf32>
    %346 = vector.shape_cast %345 : vector<16xf32> to vector<16x1xf32>
    %347 = vector.broadcast %346 : vector<16x1xf32> to vector<16x256xf32>
    %348 = arith.subf %344, %347 : vector<16x256xf32>
    %349 = math.exp %348 : vector<16x256xf32>
    %cst_159 = arith.constant dense<0.000000e+00> : vector<16xf32>
    %350 = vector.multi_reduction <add>, %349, %cst_159 [1] : vector<16x256xf32> to vector<16xf32>
    %351 = vector.shape_cast %350 : vector<16xf32> to vector<16x1xf32>
    %352 = vector.broadcast %351 : vector<16x1xf32> to vector<16x256xf32>
    %353 = arith.divf %349, %352 : vector<16x256xf32>
    %c0_160 = arith.constant 0 : index
    %c0_161 = arith.constant 0 : index
    %354 = vector.load %arg9[%c0_160, %c0_161] : memref<16x256xf32, #tpu.memory_space<vmem>>, vector<16x256xf32>
    tpu.vector_store %arg9[%c0_160, %c0_161], %353 {strides = array<i32>} : memref<16x256xf32, #tpu.memory_space<vmem>>, vector<16x256xf32>,
    return
  }
  func.func @transform_0(%arg0: i32) -> (i32, i32) {
    %c0_i32 = arith.constant 0 : i32
    %c0_i32_0 = arith.constant 0 : i32
    %c0_i32_1 = arith.constant 0 : i32
    return %c0_i32, %c0_i32_0 : i32, i32
  }
  func.func @transform_1(%arg0: i32) -> (i32, i32, i32) {
    %c0_i32 = arith.constant 0 : i32
    %c0_i32_0 = arith.constant 0 : i32
    %c0_i32_1 = arith.constant 0 : i32
    %c0_i32_2 = arith.constant 0 : i32
    return %c0_i32, %c0_i32_0, %c0_i32_1 : i32, i32, i32
  }
  func.func @transform_2(%arg0: i32) -> (i32, i32) {
    %c0_i32 = arith.constant 0 : i32
    %c0_i32_0 = arith.constant 0 : i32
    %c0_i32_1 = arith.constant 0 : i32
    return %c0_i32, %c0_i32_0 : i32, i32
  }
  func.func @transform_3(%arg0: i32) -> (i32, i32, i32) {
    %c0_i32 = arith.constant 0 : i32
    %c0_i32_0 = arith.constant 0 : i32
    %c0_i32_1 = arith.constant 0 : i32
    %c0_i32_2 = arith.constant 0 : i32
    return %c0_i32, %c0_i32_0, %c0_i32_1 : i32, i32, i32
  }
  func.func @transform_4(%arg0: i32) -> (i32, i32, i32) {
    %c0_i32 = arith.constant 0 : i32
    %c0_i32_0 = arith.constant 0 : i32
    %c0_i32_1 = arith.constant 0 : i32
    %c0_i32_2 = arith.constant 0 : i32
    return %c0_i32, %c0_i32_0, %c0_i32_1 : i32, i32, i32
  }
  func.func @transform_5(%arg0: i32) -> (i32, i32, i32) {
    %c0_i32 = arith.constant 0 : i32
    %c0_i32_0 = arith.constant 0 : i32
    %c0_i32_1 = arith.constant 0 : i32
    %c0_i32_2 = arith.constant 0 : i32
    return %c0_i32, %c0_i32_0, %c0_i32_1 : i32, i32, i32
  }
  func.func @transform_6(%arg0: i32) -> (i32, i32, i32) {
    %c0_i32 = arith.constant 0 : i32
    %c0_i32_0 = arith.constant 0 : i32
    %c0_i32_1 = arith.constant 0 : i32
    %c0_i32_2 = arith.constant 0 : i32
    return %c0_i32, %c0_i32_0, %c0_i32_1 : i32, i32, i32
  }
  func.func @transform_7(%arg0: i32) -> (i32, i32) {
    %c0_i32 = arith.constant 0 : i32
    %c0_i32_0 = arith.constant 0 : i32
    %c0_i32_1 = arith.constant 0 : i32
    return %c0_i32, %c0_i32_0 : i32, i32
  }
  func.func @transform_8(%arg0: i32) -> (i32, i32) {
    %c0_i32 = arith.constant 0 : i32
    %c0_i32_0 = arith.constant 0 : i32
    %c0_i32_1 = arith.constant 0 : i32
    return %c0_i32, %c0_i32_0 : i32, i32
  }
}

</mosaic_0001>

<bundles_post_ra>
// kernel: tpu_custom_call.1
= control target key start
LH: loop header
LB: loop body
LE: loop exit
PB: predicated region body
PF: predicated region fallthrough
CT: control target
= control target key end

     0   :  { %v3196_v2 = vmov 1   ;;  %v3197_v3 = vmov 0   ;;  %s4039_s0 = inlined_call_operand.vmem [shape: s32[16,2], index: 0, kind: input, shape index: {}]   ;;  %s4040_s1 = inlined_call_operand.vmem [shape: f32[2,16,16], index: 1, kind: input, shape index: {}]   ;;  %s4041_s2 = inlined_call_operand.vmem [shape: bf16[256,64], index: 2, kind: input, shape index: {}]   ;;  %s4042_s3 = inlined_call_operand.vmem [shape: bf16[12,64,32], index: 3, kind: input, shape index: {}]   ;;  %s4043_s4 = inlined_call_operand.vmem [shape: bf16[2,64,64], index: 4, kind: input, shape index: {}]   ;;  %s4044_s5 = inlined_call_operand.vmem [shape: bf16[2,64,256], index: 5, kind: input, shape index: {}]   ;;  %s4045_s6 = inlined_call_operand.vmem [shape: bf16[2,256,64], index: 6, kind: input, shape index: {}]   ;;  %s4046_s7 = inlined_call_operand.vmem [shape: f32[27,256], index: 7, kind: input, shape index: {}]   ;;  %s4047_s8 = inlined_call_operand.hbm [shape: f32[16,256], index: 8, kind: output, shape index: {}]  }
   0x1   :  { %v63_v0 = vld [vmem:[%s4039_s0] sm:$0xff]  ;;  %v2938_v1 = vld [vmem:[%s4041_s2 + $0x38] sm:$0xff]  ;;  %3060 = vset.pattern.permute.xlu1 %v3196_v2  ;;  %3059 = vset.pattern.permute.xlu0 %v3197_v3  ;;  %v2937_v5 = vld [vmem:[%s4041_s2 + $0x30] sm:$0xff] }
   0x2   :  { %v2946_v4 = vld [vmem:[%s4041_s2 + $0x78] sm:$0xff]  ;;  %87 = vperm.xlu1 %3060, %v63_v0   ;;  %69 = vperm.xlu0 %3059, %v63_v0   ;;  %v2945_v6 = vld [vmem:[%s4041_s2 + $0x70] sm:$0xff] }
   0x3   :  { %206 = vmatpush.bf16.msra.mxu2 %v2938_v1  ;;  %220 = vmatpush.bf16.msra.mxu3 %v2946_v4 }
   0x4   :  { %13 = vsyncpa [#allocation3], 0  ;;  %v64_v7 = vld [vmem:[%s4039_s0 + $0x8] sm:$0xff]  ;;  %v2935_v10 = vld [vmem:[%s4041_s2 + $0x20] sm:$0xff]  ;;  %v65_v22 = vlaneseq  ;;  %v3198_v27 = vmov 0.0   ;;  %vm273_vm8 = vcmask 523264  }
   0x5   :  { %v2936_v8 = vld [vmem:[%s4041_s2 + $0x28] sm:$0xff]  ;;  %v2943_v11 = vld [vmem:[%s4041_s2 + $0x60] sm:$0xff]  ;;  %v2934_v12 = vld [vmem:[%s4041_s2 + $0x18] sm:$0xff]  ;;  %vm389_vm9 = vcmask 261120   ;;  %vm416_vm10 = vcmask 130048   ;;  %s3199_s23 = smov 32  }
   0x6   :  { %v2944_v9 = vld [vmem:[%s4041_s2 + $0x68] sm:$0xff]  ;;  %v2942_v13 = vld [vmem:[%s4041_s2 + $0x58] sm:$0xff]  ;;  %v2933_v14 = vld [vmem:[%s4041_s2 + $0x10] sm:$0xff]  ;;  %v66_v23 = vand.u32 127, %v65_v22  ;;  %s2262_s26 = sshll.u32 %s4047_s8, 4  ;;  %s3203_s27 = smov 16   ;;  %s2263_s26 = int_to_ptr.hbm [resolvable:$true] %s2262_s26 }
   0x7   :  { %207 = vmatpush.bf16.msra.mxu2 %v2937_v5  ;;  %221 = vmatpush.bf16.msra.mxu3 %v2945_v6  ;;  %v2941_v15 = vld [vmem:[%s4041_s2 + $0x50] sm:$0xff]  ;;  %v2932_v16 = vld [vmem:[%s4041_s2 + $0x8] sm:$0xff]  ;;  %v2931_v18 = vld [vmem:[%s4041_s2] sm:$0xff] }
   0x8   :  { %v2940_v17 = vld [vmem:[%s4041_s2 + $0x48] sm:$0xff]  ;;  %v2939_v19 = vld [vmem:[%s4041_s2 + $0x40] sm:$0xff]  ;;  %v2950_v20 = vld [vmem:[%s4042_s3 + $0x18] sm:$0xff]  ;;  %v67_v26 = vadd.s32 128, %v66_v23 }
   0x9   :  { %v2954_v21 = vld [vmem:[%s4042_s3 + $0x38] sm:$0xff]  ;;  %v2949_v44 = vld [vmem:[%s4042_s3 + $0x10] sm:$0xff]  ;;  %v2948_v46 = vld [vmem:[%s4042_s3 + $0x8] sm:$0xff] }
   0xa   :  { %90 = vperm.xlu1 %3060, %v64_v7   ;;  %72 = vperm.xlu0 %3059, %v64_v7   ;;  %v2953_v45 = vld [vmem:[%s4042_s3 + $0x30] sm:$0xff]  ;;  %v2952_v47 = vld [vmem:[%s4042_s3 + $0x28] sm:$0xff]  ;;  %v2947_v48 = vld [vmem:[%s4042_s3] sm:$0xff] }
   0xb   :  { %208 = vmatpush.bf16.msra.mxu2 %v2936_v8  ;;  %222 = vmatpush.bf16.msra.mxu3 %v2944_v9  ;;  %v2951_v49 = vld [vmem:[%s4042_s3 + $0x20] sm:$0xff]  ;;  %v2958_v50 = vld [vmem:[%s4042_s3 + $0x58] sm:$0xff]  ;;  %v2957_v52 = vld [vmem:[%s4042_s3 + $0x50] sm:$0xff] }
   0xc   :  { %v2970_v51 = vld [vmem:[%s4042_s3 + $0xb8] sm:$0xff]  ;;  %v2969_v53 = vld [vmem:[%s4042_s3 + $0xb0] sm:$0xff]  ;;  %v2956_v54 = vld [vmem:[%s4042_s3 + $0x48] sm:$0xff] }
   0xd   :  { %v2968_v55 = vld [vmem:[%s4042_s3 + $0xa8] sm:$0xff]  ;;  %v2955_v56 = vld [vmem:[%s4042_s3 + $0x40] sm:$0xff]  ;;  %v300_v3 = vld [vmem:[%s4046_s7 + $0x10] ss:$0 sm:$0xff] }
   0xe   :  { %v2967_v57 = vld [vmem:[%s4042_s3 + $0xa0] sm:$0xff]  ;;  %v2962_v9 = vld [vmem:[%s4042_s3 + $0x78] sm:$0xff] }
   0xf   :  { %209 = vmatpush.bf16.msra.mxu2 %v2935_v10  ;;  %223 = vmatpush.bf16.msra.mxu3 %v2943_v11  ;;  %v248_v11 = vld [vmem:[%s4046_s7 + $0x7] ss:$0 sm:$0xff] }
  0x12   :  { %3071 = vset.pattern.permute.xlu0 %v3196_v2 }
  0x13   :  { %210 = vmatpush.bf16.msra.mxu2 %v2934_v12  ;;  %224 = vmatpush.bf16.msra.mxu3 %v2942_v13  ;;  %v2961_v13 = vld [vmem:[%s4042_s3 + $0x70] sm:$0xff] }
  0x17   :  { %211 = vmatpush.bf16.msra.mxu2 %v2933_v14  ;;  %225 = vmatpush.bf16.msra.mxu3 %v2941_v15 }
  0x1b   :  { %212 = vmatpush.bf16.msra.mxu2 %v2932_v16  ;;  %226 = vmatpush.bf16.msra.mxu3 %v2940_v17 }
  0x1f   :  { %213 = vmatpush.bf16.msra.mxu2 %v2931_v18  ;;  %227 = vmatpush.bf16.msra.mxu3 %v2939_v19  ;;  %v2960_v18 = vld [vmem:[%s4042_s3 + $0x68] sm:$0xff]  ;;  %v348_v19 = vld [vmem:[%s4046_s7 + $0x11] ss:$0 sm:$0xff] }
  0x23   :  { %281 = vmatpush.bf16.msrb.mxu2 %v2950_v20  ;;  %329 = vmatpush.bf16.msrb.mxu3 %v2954_v21  ;;  %v589_v20 = vld [vmem:[%s4046_s7 + $0x14] ss:$0 sm:$0xff]  ;;  %v2959_v21 = vld [vmem:[%s4042_s3 + $0x60] sm:$0xff] }
  0x27   :  { %282 = vmatpush.bf16.msrb.mxu2 %v2949_v44  ;;  %330 = vmatpush.bf16.msrb.mxu3 %v2953_v45 }
  0x2b   :  { %283 = vmatpush.bf16.msrb.mxu2 %v2948_v46  ;;  %331 = vmatpush.bf16.msrb.mxu3 %v2952_v47 }
  0x2f   :  { %284 = vmatpush.bf16.msrb.mxu2 %v2947_v48  ;;  %332 = vmatpush.bf16.msrb.mxu3 %v2951_v49 }
  0x74   :  { %v88_v24 = vpop.permute.xlu1 %87  ;;  %v70_v25 = vpop.permute.xlu0 %69 }
  0x75   :  { %vm92_vm0 = vcmp.eq.s32.totalorder %v66_v23, %v88_v24  ;;  %vm93_vm1 = vcmp.eq.s32.totalorder %v67_v26, %v88_v24  ;;  %vm74_vm2 = vcmp.eq.s32.totalorder %v66_v23, %v70_v25  ;;  %vm75_vm3 = vcmp.eq.s32.totalorder %v67_v26, %v70_v25 }
  0x76   :  { %v2278_v28 = vsel %vm92_vm0, 1.0, %v3198_v27  ;;  %v2279_v29 = vsel %vm93_vm1, 1.0, %v3198_v27  ;;  %v2274_v30 = vsel %vm74_vm2, 1.0, %v3198_v27  ;;  %v2275_v31 = vsel %vm75_vm3, 1.0, %v3198_v27 }
  0x77   :  { %v104_v38 = vadd.f32 %v2278_v28, %v2274_v30  ;;  %v105_v40 = vadd.f32 %v2279_v29, %v2275_v31  ;;  %v3398_v30 = vld [vmem:[%s4040_s1] sm:$0xff] }
  0x7c   :  { %v91_v32 = vpop.permute.xlu1 %90  ;;  %v73_v33 = vpop.permute.xlu0 %72 }
  0x7d   :  { %vm94_vm4 = vcmp.eq.s32.totalorder %v66_v23, %v91_v32  ;;  %vm95_vm5 = vcmp.eq.s32.totalorder %v67_v26, %v91_v32  ;;  %vm76_vm6 = vcmp.eq.s32.totalorder %v66_v23, %v73_v33  ;;  %vm77_vm7 = vcmp.eq.s32.totalorder %v67_v26, %v73_v33  ;;  %v3403_v33 = vld [vmem:[%s4040_s1 + $0x10] sm:$0xff] }
  0x7e   :  { %v2280_v34 = vsel %vm94_vm4, 1.0, %v3198_v27  ;;  %v2281_v35 = vsel %vm95_vm5, 1.0, %v3198_v27  ;;  %v2276_v36 = vsel %vm76_vm6, 1.0, %v3198_v27  ;;  %v2277_v37 = vsel %vm77_vm7, 1.0, %v3198_v27 }
  0x7f   :  { %v106_v39 = vadd.f32 %v2280_v34, %v2276_v36  ;;  %v107_v41 = vadd.f32 %v2281_v35, %v2277_v37  ;;  %v3411_v37 = vld [vmem:[%s4040_s1 + $0x8] sm:$0xff] }
  0x81   :  { %v108_v42 = vpack.c.bf16 %v106_v39, %v104_v38  ;;  %v109_v43 = vpack.c.bf16 %v107_v41, %v105_v40  ;;  %v3416_v40 = vld [vmem:[%s4040_s1 + $0x18] sm:$0xff] }
  0x83   :  { %214 = vmatmul.bf16.vlgmr.msra.gmra.mxu2 %v108_v42  ;;  %228 = vmatmul.bf16.vlgmr.msra.gmra.mxu3 %v109_v43 }
  0x84   :  { %377 = vmatpush.bf16.msra.mxu2 %v2958_v50  ;;  %618 = vmatpush.bf16.msra.mxu3 %v2970_v51 }
  0x88   :  { %378 = vmatpush.bf16.msra.mxu2 %v2957_v52  ;;  %619 = vmatpush.bf16.msra.mxu3 %v2969_v53 }
  0x8c   :  { %379 = vmatpush.bf16.msra.mxu2 %v2956_v54  ;;  %620 = vmatpush.bf16.msra.mxu3 %v2968_v55  ;;  %v2966_v54 = vld [vmem:[%s4042_s3 + $0x98] sm:$0xff]  ;;  %v2965_v55 = vld [vmem:[%s4042_s3 + $0x90] sm:$0xff] }
  0x90   :  { %380 = vmatpush.bf16.msra.mxu2 %v2955_v56  ;;  %621 = vmatpush.bf16.msra.mxu3 %v2967_v57  ;;  %v2964_v57 = vld [vmem:[%s4042_s3 + $0x88] sm:$0xff] }
 0x106   :  { %v215_v58 = vpop.f32.mrf.mxu2  ;;  %v229_v59 = vpop.f32.mrf.mxu3 }
 0x107   :  { %v3351_v62 = vadd.f32 %v229_v59, %v215_v58  ;;  %v2963_v59 = vld [vmem:[%s4042_s3 + $0x80] sm:$0xff] }
 0x10e   :  { %v217_v60 = vpop.f32.mrf.mxu2  ;;  %v231_v61 = vpop.f32.mrf.mxu3 }
 0x10f   :  { %v3353_v63 = vadd.f32 %v231_v61, %v217_v60 }
 0x111   :  { %v3357_v0 = vpack.c.bf16 %v3353_v63, %v3351_v62 }
 0x113   :  { %2364 = vmatmul.msk.bf16.vlgmr.msrb.gmra.mxu2 %vm273_vm8, %v3357_v0  ;;  %2389 = vmatmul.msk.bf16.vlgmr.msrb.gmra.mxu3 %vm273_vm8, %v3357_v0 }
 0x123   :  { %2414 = vmatmul.msk.bf16.vlgmr.msra.gmra.mxu2 %vm273_vm8, %v3357_v0  ;;  %2491 = vmatmul.msk.bf16.vlgmr.msra.gmra.mxu3 %vm273_vm8, %v3357_v0 }
 0x196   :  { %v286_v1 = vpop.f32.mrf.mxu2  ;;  %v334_v2 = vpop.f32.mrf.mxu3 }
 0x197   :  { %v335_v6 = vadd.f32 %v334_v2, %v300_v3  ;;  %v287_v16 = vadd.f32 %v286_v1, %v248_v11 }
 0x19e   :  { %v288_v4 = vpop.f32.mrf.mxu2  ;;  %v336_v5 = vpop.f32.mrf.mxu3 }
 0x19f   :  { %v337_v7 = vadd.f32 %v336_v5, %v300_v3  ;;  %v289_v12 = vadd.f32 %v288_v4, %v248_v11 }
 0x1a1   :  { %v388_v8 = vpack.c.bf16 %v337_v7, %v335_v6  ;;  %v387_v17 = vpack.c.bf16 %v289_v12, %v287_v16 }
 0x1a3   :  { %v394_v10 = vsel %vm389_vm9, %v388_v8, 0 }
 0x1a4   :  { %403 = vmatpush.bf16.xpose.msra.mxu1 %v394_v10 }
 0x1a6   :  { %v382_v14 = vpop.f32.mrf.mxu2  ;;  %v623_v15 = vpop.f32.mrf.mxu3 }
 0x1a7   :  { %v383_v24 = vadd.f32 %v382_v14, %v348_v19  ;;  %v624_v25 = vadd.f32 %v623_v15, %v589_v20 }
 0x1ab   :  { %2415 = vmatmul.msk.bf16.vlgmr.msra.gmra.mxu1 %vm389_vm9, %v387_v17 }
 0x1ac   :  { %522 = vmatpush.bf16.msrb.mxu1 %v2962_v9 }
 0x1ae   :  { %v384_v22 = vpop.f32.mrf.mxu2  ;;  %v625_v23 = vpop.f32.mrf.mxu3 }
 0x1af   :  { %v385_v26 = vadd.f32 %v384_v22, %v348_v19  ;;  %v626_v27 = vadd.f32 %v625_v23, %v589_v20 }
 0x1b0   :  { %523 = vmatpush.bf16.msrb.mxu1 %v2961_v13 }
 0x1b1   :  { %v705_v28 = vpack.c.bf16 %v626_v27, %v624_v25  ;;  %v466_v29 = vpack.c.bf16 %v385_v26, %v383_v24  ;;  %v541_v26 = vld [vmem:[%s4046_s7 + $0x13] ss:$0 sm:$0xff] }
 0x1b3   :  { %477 = vmatpush.bf16.msra.mxu0 %v466_v29 }
 0x1b4   :  { %524 = vmatpush.bf16.msrb.mxu1 %v2960_v18 }
 0x1b7   :  { %570 = vmatpush.bf16.msrb.mxu0 %v2966_v54 }
 0x1b8   :  { %525 = vmatpush.bf16.msrb.mxu1 %v2959_v21 }
 0x1bb   :  { %2441 = vmatmul.msk.bf16.vlgmr.msrb.gmra.mxu1 %vm273_vm8, %v3357_v0  ;;  %571 = vmatpush.bf16.msrb.mxu0 %v2965_v55 }
 0x1bc   :  { %716 = vmatpush.bf16.msra.mxu1 %v705_v28 }
 0x1bf   :  { %572 = vmatpush.bf16.msrb.mxu0 %v2964_v57 }
 0x1c3   :  { %573 = vmatpush.bf16.msrb.mxu0 %v2963_v59 }
 0x228   :  { %v405_v31 = vpop.f32.mrf.mxu1 }
 0x229   :  { %v410_v32 = vmul.f32 0.17677669, %v405_v31 }
 0x22b   :  { %v412_v34 = vmul.f32 %v410_v32, %v3398_v30 }
 0x22d   :  { %v414_v35 = vadd.f32 %v3403_v33, %v412_v34 }
 0x22f   :  { %v417_v36 = vsel %vm416_vm10, %v414_v35, -inf }
 0x230   :  { %418 = vmax.xlane.f32.xlu2 %v417_v36  ;;  %v407_v38 = vpop.f32.mrf.mxu1 }
 0x231   :  { %v411_v39 = vmul.f32 0.17677669, %v407_v38 }
 0x233   :  { %v413_v41 = vmul.f32 %v411_v39, %v3411_v37 }
 0x235   :  { %v415_v42 = vadd.f32 %v3416_v40, %v413_v41 }
 0x237   :  { %v420_v43 = vsel %vm416_vm10, %v415_v42, -inf }
 0x238   :  { %421 = vmax.xlane.f32.xlu2 %v420_v43  ;;  %v527_v25 = vpop.f32.mrf.mxu1 }
 0x240   :  { %v529_v32 = vpop.f32.mrf.mxu1 }
 0x2a3   :  { %v419_v44 = vpop.xlane.xlu2 %418 }
 0x2a4   :  { %v423_v45 = vsub.f32 %v414_v35, %v419_v44 }
 0x2a6   :  { %v425_v46 = vmul.f32 1.442695, %v423_v45 }
 0x2a8   :  { %3072 = vpow2.f32 %v425_v46 }
 0x2ab   :  { %v422_v47 = vpop.xlane.xlu2 %421 }
 0x2ac   :  { %v424_v48 = vsub.f32 %v415_v42, %v422_v47 }
 0x2ae   :  { %v3073_v49 = vpop.eup %3072  ;;  %v427_v50 = vmul.f32 1.442695, %v424_v48 }
 0x2af   :  { %v429_v51 = vsel %vm416_vm10, %v3073_v49, 0.0 }
 0x2b0   :  { %3074 = vpow2.f32 %v427_v50  ;;  %430 = vadd.xlane.f32.xlu0 %v429_v51 }
 0x2b6   :  { %v3075_v52 = vpop.eup %3074 }
 0x2b7   :  { %v432_v53 = vsel %vm416_vm10, %v3075_v52, 0.0 }
 0x2b8   :  { %433 = vadd.xlane.f32.xlu1 %v432_v53 }
 0x323   :  { %v431_v56 = vpop.xlane.xlu0 %430 }
 0x324   :  { %3076 = vrcp.f32 %v431_v56  ;;  %v446_v6 = vand.u32 2147483648, %v431_v56  ;;  %vm440_vm12 = vweird.f32 %v431_v56  ;;  %v444_v7 = vand.u32 2147483647, %v431_v56 }
 0x326   :  { %v447_v13 = vor.u32 1.1754944e-38, %v446_v6  ;;  %vm445_vm15 = vcmp.eq.f32.partialorder %v444_v7, 8.507059e+37 }
 0x32a   :  { %v3077_v58 = vpop.eup %3076 }
 0x32b   :  { %v436_v60 = vmul.f32 %v3077_v58, %v431_v56  ;;  %v434_v61 = vpop.xlane.xlu1 %433  ;;  %vm441_vm11 = vweird.f32 %v3077_v58 }
 0x32c   :  { %3078 = vrcp.f32 %v434_v61  ;;  %vm442_vm13 = vmor %vm440_vm12, %vm441_vm11  ;;  %v461_v9 = vand.u32 2147483648, %v434_v61  ;;  %v459_v11 = vand.u32 2147483647, %v434_v61  ;;  %vm455_vm0 = vweird.f32 %v434_v61 }
 0x32d   :  { %v437_v1 = vsub.f32 1.0, %v436_v60 }
 0x32e   :  { %v462_v15 = vor.u32 1.1754944e-38, %v461_v9  ;;  %vm460_vm2 = vcmp.eq.f32.partialorder %v459_v11, 8.507059e+37 }
 0x32f   :  { %v438_v2 = vmul.f32 %v3077_v58, %v437_v1 }
 0x331   :  { %v439_v4 = vadd.f32 %v3077_v58, %v438_v2 }
 0x332   :  { %v3079_v3 = vpop.eup %3078 }
 0x333   :  { %v451_v5 = vmul.f32 %v3079_v3, %v434_v61  ;;  %vm456_vm14 = vweird.f32 %v3079_v3  ;;  %v443_v12 = vsel %vm442_vm13, %v3077_v58, %v439_v4 }
 0x334   :  { %vm457_vm1 = vmor %vm455_vm0, %vm456_vm14  ;;  %v448_v16 = vsel %vm445_vm15, %v447_v13, %v443_v12 }
 0x335   :  { %v452_v8 = vsub.f32 1.0, %v451_v5  ;;  %v449_v19 = vmul.f32 %v3073_v49, %v448_v16 }
 0x337   :  { %v453_v10 = vmul.f32 %v3079_v3, %v452_v8 }
 0x339   :  { %v454_v14 = vadd.f32 %v3079_v3, %v453_v10 }
 0x33b   :  { %v458_v17 = vsel %vm457_vm1, %v3079_v3, %v454_v14 }
 0x33c   :  { %v463_v18 = vsel %vm460_vm2, %v462_v15, %v458_v17 }
 0x33d   :  { %v464_v20 = vmul.f32 %v3075_v52, %v463_v18 }
 0x33f   :  { %v465_v21 = vpack.c.bf16 %v464_v20, %v449_v19 }
 0x341   :  { %2416 = vmatmul.msk.bf16.vlgmr.msra.gmra.mxu0 %vm416_vm10, %v465_v21  ;;  %v2974_v21 = vld [vmem:[%s4043_s4 + $0x18] sm:$0xff] }
 0x342   :  { %774 = vmatpush.bf16.msrb.mxu2 %v2974_v21  ;;  %v2516_v21 = vld [vmem:[%s4044_s5 + $0x8] sm:$0xf0] }
 0x351   :  { %2466 = vmatmul.msk.bf16.vlgmr.msrb.gmra.mxu0 %vm273_vm8, %v3357_v0  ;;  %v493_v0 = vld [vmem:[%s4046_s7 + $0x12] ss:$0 sm:$0xff] }
 0x352   :  { %v530_v35 = vadd.f32 %v529_v32, %v493_v0  ;;  %v528_v36 = vadd.f32 %v527_v25, %v493_v0  ;;  %v2972_v25 = vld [vmem:[%s4043_s4 + $0x8] sm:$0xff] }
 0x354   :  { %v628_v38 = vpack.c.bf16 %v530_v35, %v528_v36 }
 0x3be   :  { %v3438_v22 = vpop.f32.mrf.mxu0 }
 0x3c6   :  { %v3440_v23 = vpop.f32.mrf.mxu0 }
 0x3ce   :  { %v575_v24 = vpop.f32.mrf.mxu0 }
 0x3cf   :  { %v576_v28 = vadd.f32 %v575_v24, %v541_v26  ;;  %v2973_v24 = vld [vmem:[%s4043_s4 + $0x10] sm:$0xff] }
 0x3d0   :  { %775 = vmatpush.bf16.msrb.mxu2 %v2973_v24 }
 0x3d4   :  { %776 = vmatpush.bf16.msrb.mxu2 %v2972_v25 }
 0x3d6   :  { %v577_v27 = vpop.f32.mrf.mxu0 }
 0x3d7   :  { %v578_v29 = vadd.f32 %v577_v27, %v541_v26 }
 0x3d9   :  { %v629_v31 = vpack.c.bf16 %v578_v29, %v576_v28  ;;  %v2971_v29 = vld [vmem:[%s4043_s4] sm:$0xff] }
 0x3da   :  { %777 = vmatpush.bf16.msrb.mxu2 %v2971_v29 }
 0x3db   :  { %v634_v34 = vsel %vm389_vm9, %v629_v31, 0 }
 0x3dc   :  { %643 = vmatpush.bf16.xpose.msra.mxu0 %v634_v34 }
 0x3e3   :  { %2492 = vmatmul.msk.bf16.vlgmr.msra.gmra.mxu0 %vm389_vm9, %v628_v38  ;;  %v742_v38 = vld [vmem:[%s4046_s7] ss:$0 sm:$0xff] }
 0x460   :  { %v645_v39 = vpop.f32.mrf.mxu0 }
 0x461   :  { %v650_v41 = vmul.f32 0.17677669, %v645_v39 }
 0x463   :  { %v652_v42 = vmul.f32 %v650_v41, %v3398_v30 }
 0x465   :  { %v654_v43 = vadd.f32 %v3403_v33, %v652_v42 }
 0x467   :  { %v656_v44 = vsel %vm416_vm10, %v654_v43, -inf }
 0x468   :  { %657 = vmax.xlane.f32.xlu2 %v656_v44  ;;  %v647_v45 = vpop.f32.mrf.mxu0 }
 0x469   :  { %v651_v46 = vmul.f32 0.17677669, %v647_v45 }
 0x46b   :  { %v653_v47 = vmul.f32 %v651_v46, %v3411_v37  ;;  %v3200_v46 = vmov 64.0  }
 0x46d   :  { %v655_v48 = vadd.f32 %v3416_v40, %v653_v47 }
 0x46f   :  { %v659_v49 = vsel %vm416_vm10, %v655_v48, -inf }
 0x470   :  { %660 = vmax.xlane.f32.xlu2 %v659_v49 }
 0x4db   :  { %v658_v50 = vpop.xlane.xlu2 %657 }
 0x4dc   :  { %v662_v51 = vsub.f32 %v654_v43, %v658_v50 }
 0x4de   :  { %v664_v52 = vmul.f32 1.442695, %v662_v51 }
 0x4e0   :  { %3080 = vpow2.f32 %v664_v52 }
 0x4e3   :  { %v661_v53 = vpop.xlane.xlu2 %660 }
 0x4e4   :  { %v663_v30 = vsub.f32 %v655_v48, %v661_v53 }
 0x4e6   :  { %v3081_v54 = vpop.eup %3080  ;;  %v666_v33 = vmul.f32 1.442695, %v663_v30 }
 0x4e7   :  { %v668_v55 = vsel %vm416_vm10, %v3081_v54, 0.0 }
 0x4e8   :  { %3082 = vpow2.f32 %v666_v33  ;;  %669 = vadd.xlane.f32.xlu2 %v668_v55 }
 0x4ee   :  { %v3083_v56 = vpop.eup %3082 }
 0x4ef   :  { %v671_v37 = vsel %vm416_vm10, %v3083_v56, 0.0 }
 0x4f0   :  { %672 = vadd.xlane.f32.xlu2 %v671_v37 }
 0x55b   :  { %v670_v57 = vpop.xlane.xlu2 %669 }
 0x55c   :  { %3084 = vrcp.f32 %v670_v57  ;;  %v685_v5 = vand.u32 2147483648, %v670_v57  ;;  %vm679_vm4 = vweird.f32 %v670_v57  ;;  %v683_v6 = vand.u32 2147483647, %v670_v57 }
 0x55e   :  { %v686_v12 = vor.u32 1.1754944e-38, %v685_v5  ;;  %vm684_vm7 = vcmp.eq.f32.partialorder %v683_v6, 8.507059e+37  ;;  %v2979_v5 = vld [vmem:[%s4044_s5 + $0x24] sm:$0xf] }
 0x562   :  { %v3085_v58 = vpop.eup %3084 }
 0x563   :  { %v675_v59 = vmul.f32 %v3085_v58, %v670_v57  ;;  %v673_v60 = vpop.xlane.xlu2 %672  ;;  %vm680_vm3 = vweird.f32 %v3085_v58 }
 0x564   :  { %3086 = vrcp.f32 %v673_v60  ;;  %vm681_vm5 = vmor %vm679_vm4, %vm680_vm3  ;;  %v700_v8 = vand.u32 2147483648, %v673_v60  ;;  %v698_v11 = vand.u32 2147483647, %v673_v60  ;;  %vm694_vm11 = vweird.f32 %v673_v60 }
 0x565   :  { %v676_v61 = vsub.f32 1.0, %v675_v59  ;;  %3088 = vrcp.f32 %v3200_v46  ;;  %v2982_v59 = vld [vmem:[%s4044_s5 + $0x34] sm:$0xf0] }
 0x566   :  { %v701_v15 = vor.u32 1.1754944e-38, %v700_v8  ;;  %vm699_vm13 = vcmp.eq.f32.partialorder %v698_v11, 8.507059e+37  ;;  %v2977_v11 = vld [vmem:[%s4044_s5 + $0x14] sm:$0xf] }
 0x567   :  { %v677_v1 = vmul.f32 %v3085_v58, %v676_v61 }
 0x569   :  { %v678_v3 = vadd.f32 %v3085_v58, %v677_v1  ;;  %v2540_v1 = vld [vmem:[%s4044_s5 + $0x38] sm:$0xf0] }
 0x56a   :  { %v3087_v2 = vpop.eup %3086 }
 0x56b   :  { %v690_v4 = vmul.f32 %v3087_v2, %v673_v60  ;;  %v682_v9 = vsel %vm681_vm5, %v3085_v58, %v678_v3  ;;  %vm695_vm6 = vweird.f32 %v3087_v2  ;;  %v3089_v47 = vpop.eup %3088  ;;  %v2538_v58 = vld [vmem:[%s4044_s5 + $0x30] sm:$0xf]  ;;  %v2981_v60 = vld [vmem:[%s4044_s5 + $0x34] sm:$0xf]  ;;  %v2530_v3 = vld [vmem:[%s4044_s5 + $0x20] sm:$0xf] }
 0x56c   :  { %v687_v14 = vsel %vm684_vm7, %v686_v12, %v682_v9  ;;  %vm696_vm12 = vmor %vm694_vm11, %vm695_vm6  ;;  %v795_v48 = vmul.f32 64.0, %v3089_v47  ;;  %vm799_vm14 = vweird.f32 %v3089_v47  ;;  %v2539_v61 = vor.u32 %v2982_v59, %v2538_v58  ;;  %v2522_v9 = vld [vmem:[%s4044_s5 + $0x10] sm:$0xf]  ;;  %v2986_v59 = vld [vmem:[%s4045_s6 + $0x18] sm:$0xff] }
 0x56d   :  { %v691_v7 = vsub.f32 1.0, %v690_v4  ;;  %v688_v18 = vmul.f32 %v3081_v54, %v687_v14  ;;  %v2980_v4 = vld [vmem:[%s4044_s5 + $0x24] sm:$0xf0]  ;;  %v2993_v58 = vld [vmem:[%s4045_s6 + $0x50] sm:$0xff] }
 0x56e   :  { %v796_v49 = vsub.f32 1.0, %v795_v48  ;;  %906 = vmatpush.bf16.msrb.mxu3 %v2539_v61  ;;  %v2531_v6 = vor.u32 %v2980_v4, %v2530_v3  ;;  %v787_v48 = vld [vmem:[%s4046_s7 + $0x2] ss:$0 sm:$0xff]  ;;  %v2985_v61 = vld [vmem:[%s4045_s6 + $0x10] sm:$0xff]  ;;  %v2984_v4 = vld [vmem:[%s4045_s6 + $0x8] sm:$0xff] }
 0x56f   :  { %v692_v10 = vmul.f32 %v3087_v2, %v691_v7  ;;  %v2532_v7 = vld [vmem:[%s4044_s5 + $0x28] sm:$0xf0] }
 0x570   :  { %v797_v50 = vmul.f32 %v3089_v47, %v796_v49  ;;  %v2535_v8 = vor.u32 %v2979_v5, %v2532_v7  ;;  %v2983_v7 = vld [vmem:[%s4045_s6] sm:$0xff] }
 0x571   :  { %v693_v13 = vadd.f32 %v3087_v2, %v692_v10  ;;  %v2978_v10 = vld [vmem:[%s4044_s5 + $0x14] sm:$0xf0] }
 0x572   :  { %v798_v51 = vadd.f32 %v3089_v47, %v797_v50  ;;  %907 = vmatpush.bf16.msrb.mxu3 %v2531_v6  ;;  %v2523_v12 = vor.u32 %v2978_v10, %v2522_v9 }
 0x573   :  { %v697_v16 = vsel %vm696_vm12, %v3087_v2, %v693_v13  ;;  %v2543_v2 = vor.u32 %v2981_v60, %v2540_v1  ;;  %v2524_v13 = vld [vmem:[%s4044_s5 + $0x18] sm:$0xf0]  ;;  %v2992_v60 = vld [vmem:[%s4045_s6 + $0x48] sm:$0xff] }
 0x574   :  { %v702_v17 = vsel %vm699_vm13, %v701_v15, %v697_v16  ;;  %v3484_v52 = vsel %vm799_vm14, %v3089_v47, %v798_v51  ;;  %v2527_v14 = vor.u32 %v2977_v11, %v2524_v13  ;;  %v2511_v1 = vld [vmem:[%s4046_s7 + $0x6] ss:$8 sm:$0x3] }
 0x575   :  { %v703_v19 = vmul.f32 %v3083_v56, %v702_v17  ;;  %920 = vmatpush.bf16.msrb.mxu0 %v2543_v2  ;;  %v2514_v17 = vld [vmem:[%s4044_s5] sm:$0xf]  ;;  %v856_v3 = vperm.slane %v2511_v1, 1  ;;  %v855_v9 = vperm.slane %v2511_v1, 0 }
 0x576   :  { %908 = vmatpush.bf16.msrb.mxu3 %v2523_v12  ;;  %v2991_v2 = vld [vmem:[%s4045_s6 + $0x40] sm:$0xff] }
 0x577   :  { %v704_v20 = vpack.c.bf16 %v703_v19, %v688_v18  ;;  %v2976_v18 = vld [vmem:[%s4044_s5 + $0x4] sm:$0xf0]  ;;  %v2975_v19 = vld [vmem:[%s4044_s5 + $0x4] sm:$0xf] }
 0x578   :  { %v2519_v25 = vor.u32 %v2975_v19, %v2516_v21 }
 0x579   :  { %2493 = vmatmul.msk.bf16.vlgmr.msra.gmra.mxu1 %vm416_vm10, %v704_v20  ;;  %921 = vmatpush.bf16.msrb.mxu0 %v2535_v8  ;;  %v2515_v20 = vor.u32 %v2976_v18, %v2514_v17 }
 0x57b   :  { %909 = vmatpush.bf16.msrb.mxu3 %v2515_v20 }
 0x57d   :  { %922 = vmatpush.bf16.msrb.mxu0 %v2527_v14 }
 0x581   :  { %923 = vmatpush.bf16.msrb.mxu0 %v2519_v25 }
 0x5f6   :  { %v718_v26 = vpop.f32.mrf.mxu1 }
 0x5fe   :  { %v720_v27 = vpop.f32.mrf.mxu1 }
 0x5ff   :  { %v3061_v28 = vpack.i.bf16 %v720_v27, %v718_v26 }
 0x601   :  { %3062 = vrot.lane.b32.xlu2 %v3061_v28, %s3199_s23 }
 0x65b   :  { %v3063_v31 = vpop.permute.xlu2 %3062 }
 0x65c   :  { %v3065_v32 = vunpack.i.h.bf16 %v3063_v31  ;;  %v3064_v34 = vunpack.i.l.bf16 %v3063_v31 }
 0x65e   :  { %v732_v0 = vsel %vm389_vm9, %v3440_v23, %v3065_v32  ;;  %v731_v35 = vsel %vm389_vm9, %v3438_v22, %v3064_v34 }
 0x65f   :  { %v733_v36 = vpack.c.bf16 %v732_v0, %v731_v35 }
 0x661   :  { %2510 = vmatmul.msk.bf16.vlgmr.msrb.gmra.mxu2 %vm273_vm8, %v733_v36 }
 0x6e4   :  { %v779_v39 = vpop.f32.mrf.mxu2 }
 0x6e5   :  { %v780_v41 = vadd.f32 %v779_v39, %v742_v38 }
 0x6e7   :  { %v784_v42 = vadd.f32 %v780_v41, %v3351_v62 }
 0x6e9   :  { %v788_v43 = vsel %vm273_vm8, %v784_v42, 0.0 }
 0x6ea   :  { %789 = vadd.xlane.f32.xlu0 %v788_v43 }
 0x6ec   :  { %v781_v44 = vpop.f32.mrf.mxu2 }
 0x6ed   :  { %v782_v45 = vadd.f32 %v781_v44, %v742_v38 }
 0x6ef   :  { %v785_v23 = vadd.f32 %v782_v45, %v3353_v63  ;;  %v786_v45 = vld [vmem:[%s4046_s7 + $0x1] ss:$0 sm:$0xff] }
 0x6f1   :  { %v791_v22 = vsel %vm273_vm8, %v785_v23, 0.0 }
 0x6f2   :  { %792 = vadd.xlane.f32.xlu1 %v791_v22 }
 0x75d   :  { %v790_v62 = vpop.xlane.xlu0 %789 }
 0x75e   :  { %v801_v53 = vmul.f32 %v3484_v52, %v790_v62 }
 0x760   :  { %v3487_v30 = vsub.f32 %v784_v42, %v801_v53  ;;  %v2998_v53 = vld [vmem:[%s4045_s6 + $0x78] sm:$0xff] }
 0x761   :  { %1111 = vmatpush.bf16.msra.mxu2 %v2998_v53 }
 0x762   :  { %v805_v63 = vmul.f32 %v3487_v30, %v3487_v30 }
 0x764   :  { %v807_v54 = vsel %vm273_vm8, %v805_v63, 0.0  ;;  %v2990_v63 = vld [vmem:[%s4045_s6 + $0x38] sm:$0xff] }
 0x765   :  { %v793_v33 = vpop.xlane.xlu1 %792  ;;  %808 = vadd.xlane.f32.xlu0 %v807_v54  ;;  %1097 = vmatpush.bf16.msrb.mxu1 %v2990_v63  ;;  %v2996_v54 = vld [vmem:[%s4045_s6 + $0x68] sm:$0xff] }
 0x766   :  { %v802_v55 = vmul.f32 %v3484_v52, %v793_v33  ;;  %v2989_v33 = vld [vmem:[%s4045_s6 + $0x30] sm:$0xff] }
 0x768   :  { %v3493_v56 = vsub.f32 %v785_v23, %v802_v55  ;;  %v2995_v55 = vld [vmem:[%s4045_s6 + $0x60] sm:$0xff] }
 0x769   :  { %1098 = vmatpush.bf16.msrb.mxu1 %v2989_v33 }
 0x76a   :  { %v806_v37 = vmul.f32 %v3493_v56, %v3493_v56 }
 0x76c   :  { %v810_v57 = vsel %vm273_vm8, %v806_v37, 0.0  ;;  %v2994_v37 = vld [vmem:[%s4045_s6 + $0x58] sm:$0xff] }
 0x76d   :  { %811 = vadd.xlane.f32.xlu1 %v810_v57  ;;  %v2987_v57 = vld [vmem:[%s4045_s6 + $0x20] sm:$0xff] }
 0x7d8   :  { %v809_v15 = vpop.xlane.xlu0 %808 }
 0x7d9   :  { %v813_v16 = vmul.f32 %v809_v15, %v3484_v52 }
 0x7db   :  { %v815_v24 = vadd.f32 1e-05, %v813_v16 }
 0x7dd   :  { %3090 = vrsqrt.f32 %v815_v24  ;;  %vm823_vm0 = vweird.f32 %v815_v24 }
 0x7e0   :  { %v812_v26 = vpop.xlane.xlu1 %811 }
 0x7e1   :  { %v814_v27 = vmul.f32 %v812_v26, %v3484_v52 }
 0x7e3   :  { %v3091_v28 = vpop.eup %3090  ;;  %v816_v29 = vadd.f32 1e-05, %v814_v27 }
 0x7e4   :  { %v818_v31 = vmul.f32 %v3091_v28, %v815_v24  ;;  %vm824_vm15 = vweird.f32 %v3091_v28 }
 0x7e5   :  { %3092 = vrsqrt.f32 %v816_v29  ;;  %vm825_vm1 = vmor %vm823_vm0, %vm824_vm15  ;;  %vm833_vm3 = vweird.f32 %v816_v29 }
 0x7e6   :  { %v819_v32 = vmul.f32 %v3091_v28, %v818_v31 }
 0x7e8   :  { %v820_v34 = vmul.f32 0.5, %v819_v32 }
 0x7ea   :  { %v821_v0 = vsub.f32 1.5, %v820_v34 }
 0x7eb   :  { %v3093_v35 = vpop.eup %3092 }
 0x7ec   :  { %v822_v36 = vmul.f32 %v3091_v28, %v821_v0  ;;  %v828_v38 = vmul.f32 %v3093_v35, %v816_v29  ;;  %vm834_vm2 = vweird.f32 %v3093_v35 }
 0x7ed   :  { %vm835_vm4 = vmor %vm833_vm3, %vm834_vm2 }
 0x7ee   :  { %v829_v39 = vmul.f32 %v3093_v35, %v828_v38  ;;  %v826_v41 = vsel %vm825_vm1, %v3091_v28, %v822_v36 }
 0x7ef   :  { %v837_v44 = vmul.f32 %v826_v41, %v3487_v30  ;;  %v2997_v30 = vld [vmem:[%s4045_s6 + $0x70] sm:$0xff] }
 0x7f0   :  { %v830_v42 = vmul.f32 0.5, %v829_v39  ;;  %1112 = vmatpush.bf16.msra.mxu2 %v2997_v30 }
 0x7f1   :  { %v839_v46 = vmul.f32 %v837_v44, %v786_v45 }
 0x7f2   :  { %v831_v43 = vsub.f32 1.5, %v830_v42 }
 0x7f3   :  { %v3556_v50 = vadd.f32 %v839_v46, %v787_v48 }
 0x7f4   :  { %v832_v23 = vmul.f32 %v3093_v35, %v831_v43  ;;  %1113 = vmatpush.bf16.msra.mxu2 %v2996_v54 }
 0x7f6   :  { %v836_v22 = vsel %vm835_vm4, %v3093_v35, %v832_v23 }
 0x7f7   :  { %v838_v47 = vmul.f32 %v836_v22, %v3493_v56  ;;  %v2988_v56 = vld [vmem:[%s4045_s6 + $0x28] sm:$0xff] }
 0x7f8   :  { %1114 = vmatpush.bf16.msra.mxu2 %v2995_v55  ;;  %1099 = vmatpush.bf16.msrb.mxu1 %v2988_v56  ;;  %v1000_v55 = vld [vmem:[%s4046_s7 + $0x3] ss:$0 sm:$0xff] }
 0x7f9   :  { %v840_v49 = vmul.f32 %v838_v47, %v786_v45 }
 0x7fb   :  { %v3558_v51 = vadd.f32 %v840_v49, %v787_v48 }
 0x7fc   :  { %1115 = vmatpush.bf16.msra.mxu2 %v2994_v37  ;;  %1100 = vmatpush.bf16.msrb.mxu1 %v2987_v57 }
 0x7fd   :  { %v843_v62 = vpack.c.bf16 %v3558_v51, %v3556_v50 }
 0x7ff   :  { %2544 = vmatmul.msk.bf16.vlgmr.msrb.gmra.mxu3 %vm273_vm8, %v843_v62  ;;  %2545 = vmatmul.msk.bf16.vlgmr.msrb.gmra.mxu0 %vm273_vm8, %v843_v62 }
 0x800   :  { %1116 = vmatpush.bf16.msra.mxu2 %v2993_v58  ;;  %1101 = vmatpush.bf16.msrb.mxu1 %v2986_v59 }
 0x804   :  { %1117 = vmatpush.bf16.msra.mxu2 %v2992_v60  ;;  %1102 = vmatpush.bf16.msrb.mxu1 %v2985_v61 }
 0x808   :  { %1118 = vmatpush.bf16.msra.mxu2 %v2991_v2  ;;  %1103 = vmatpush.bf16.msrb.mxu1 %v2984_v4 }
 0x80c   :  { %1104 = vmatpush.bf16.msrb.mxu1 %v2983_v7 }
 0x87c   :  { %v925_v5 = vpop.f32.mrf.mxu0 }
 0x87d   :  { %v926_v6 = vadd.f32 %v925_v5, %v856_v3 }
 0x87f   :  { %v935_v8 = vmul.f32 0.044715, %v926_v6  ;;  %v931_v43 = vmul.f32 0.5, %v926_v6 }
 0x881   :  { %v939_v10 = vmul.f32 %v935_v8, %v926_v6 }
 0x882   :  { %v911_v11 = vpop.f32.mrf.mxu3 }
 0x883   :  { %v943_v12 = vmul.f32 %v939_v10, %v926_v6  ;;  %v912_v13 = vadd.f32 %v911_v11, %v855_v9 }
 0x884   :  { %v927_v14 = vpop.f32.mrf.mxu0 }
 0x885   :  { %v947_v15 = vadd.f32 %v943_v12, %v926_v6  ;;  %v934_v16 = vmul.f32 0.044715, %v912_v13  ;;  %v928_v17 = vadd.f32 %v927_v14, %v856_v3  ;;  %v930_v62 = vmul.f32 0.5, %v912_v13  ;;  %v3002_v14 = vld [vmem:[%s4042_s3 + $0xd8] sm:$0xff] }
 0x886   :  { %1219 = vmatpush.bf16.msra.mxu3 %v3002_v14 }
 0x887   :  { %v938_v18 = vmul.f32 %v934_v16, %v912_v13  ;;  %v937_v19 = vmul.f32 0.044715, %v928_v17  ;;  %v951_v20 = vmul.f32 0.7978846, %v947_v15  ;;  %v933_v44 = vmul.f32 0.5, %v928_v17  ;;  %v3006_v15 = vld [vmem:[%s4042_s3 + $0xf8] sm:$0xff] }
 0x888   :  { %v3014_v16 = vld [vmem:[%s4042_s3 + $0x138] sm:$0xff]  ;;  %1267 = vmatpush.bf16.msra.mxu0 %v3006_v15 }
 0x889   :  { %v942_v21 = vmul.f32 %v938_v18, %v912_v13  ;;  %v941_v24 = vmul.f32 %v937_v19, %v928_v17  ;;  %3094 = vtanh.f32 %v951_v20  ;;  %1458 = vmatpush.bf16.msrb.mxu2 %v3014_v16  ;;  %v3005_v18 = vld [vmem:[%s4042_s3 + $0xf0] sm:$0xff]  ;;  %v3000_v20 = vld [vmem:[%s4042_s3 + $0xc8] sm:$0xff] }
 0x88a   :  { %v913_v25 = vpop.f32.mrf.mxu3  ;;  %v3013_v19 = vld [vmem:[%s4042_s3 + $0x130] sm:$0xff]  ;;  %v3020_v16 = vld [vmem:[%s4042_s3 + $0x168] sm:$0xff] }
 0x88b   :  { %v946_v26 = vadd.f32 %v942_v21, %v912_v13  ;;  %v945_v27 = vmul.f32 %v941_v24, %v928_v17  ;;  %v914_v28 = vadd.f32 %v913_v25, %v855_v9  ;;  %v3004_v21 = vld [vmem:[%s4042_s3 + $0xe8] sm:$0xff] }
 0x88c   :  { %1268 = vmatpush.bf16.msra.mxu0 %v3005_v18  ;;  %v3012_v24 = vld [vmem:[%s4042_s3 + $0x128] sm:$0xff]  ;;  %v3019_v18 = vld [vmem:[%s4042_s3 + $0x160] sm:$0xff] }
 0x88d   :  { %v949_v29 = vadd.f32 %v945_v27, %v928_v17  ;;  %v936_v31 = vmul.f32 0.044715, %v914_v28  ;;  %v950_v32 = vmul.f32 0.7978846, %v946_v26  ;;  %v932_v53 = vmul.f32 0.5, %v914_v28  ;;  %v3001_v17 = vld [vmem:[%s4042_s3 + $0xd0] sm:$0xff]  ;;  %1459 = vmatpush.bf16.msrb.mxu2 %v3013_v19 }
 0x88e   :  { %1220 = vmatpush.bf16.msra.mxu3 %v3001_v17  ;;  %v2999_v27 = vld [vmem:[%s4042_s3 + $0xc0] sm:$0xff] }
 0x88f   :  { %v953_v34 = vmul.f32 0.7978846, %v949_v29  ;;  %v940_v0 = vmul.f32 %v936_v31, %v914_v28  ;;  %v3095_v36 = vpop.eup %3094  ;;  %v3011_v29 = vld [vmem:[%s4042_s3 + $0x120] sm:$0xff] }
 0x890   :  { %v959_v41 = vadd.f32 1.0, %v3095_v36  ;;  %1269 = vmatpush.bf16.msra.mxu0 %v3004_v21  ;;  %v1286_v19 = vld [vmem:[%s4046_s7 + $0x26] ss:$0 sm:$0xff] }
 0x891   :  { %v944_v35 = vmul.f32 %v940_v0, %v914_v28  ;;  %3096 = vtanh.f32 %v953_v34  ;;  %1460 = vmatpush.bf16.msrb.mxu2 %v3012_v24 }
 0x892   :  { %3098 = vtanh.f32 %v950_v32  ;;  %v963_v22 = vmul.f32 %v959_v41, %v931_v43  ;;  %1221 = vmatpush.bf16.msra.mxu3 %v3000_v20  ;;  %v3010_v32 = vld [vmem:[%s4042_s3 + $0x118] sm:$0xff]  ;;  %v3008_v41 = vld [vmem:[%s4042_s3 + $0x108] sm:$0xff] }
 0x893   :  { %v948_v38 = vadd.f32 %v944_v35, %v914_v28  ;;  %v3003_v28 = vld [vmem:[%s4042_s3 + $0xe0] sm:$0xff]  ;;  %v3009_v35 = vld [vmem:[%s4042_s3 + $0x110] sm:$0xff] }
 0x894   :  { %1270 = vmatpush.bf16.msra.mxu0 %v3003_v28 }
 0x895   :  { %v952_v39 = vmul.f32 0.7978846, %v948_v38  ;;  %1461 = vmatpush.bf16.msrb.mxu2 %v3011_v29 }
 0x896   :  { %1222 = vmatpush.bf16.msra.mxu3 %v2999_v27  ;;  %v1477_v27 = vld [vmem:[%s4046_s7 + $0x30] ss:$0 sm:$0xff] }
 0x897   :  { %v3097_v42 = vpop.eup %3096  ;;  %3100 = vtanh.f32 %v952_v39 }
 0x898   :  { %v961_v45 = vadd.f32 1.0, %v3097_v42  ;;  %v3099_v23 = vpop.eup %3098 }
 0x899   :  { %v958_v48 = vadd.f32 1.0, %v3099_v23 }
 0x89a   :  { %v965_v46 = vmul.f32 %v961_v45, %v933_v44  ;;  %1315 = vmatpush.bf16.msrb.mxu3 %v3010_v32  ;;  %v3007_v44 = vld [vmem:[%s4042_s3 + $0x100] sm:$0xff] }
 0x89b   :  { %v962_v63 = vmul.f32 %v958_v48, %v930_v62 }
 0x89c   :  { %v967_v47 = vpack.c.bf16 %v965_v46, %v963_v22 }
 0x89d   :  { %v3101_v49 = vpop.eup %3100 }
 0x89e   :  { %1119 = vmatmul.bf16.vlgmr.msra.gmra.mxu2 %v967_v47  ;;  %v960_v30 = vadd.f32 1.0, %v3101_v49  ;;  %1316 = vmatpush.bf16.msrb.mxu3 %v3009_v35 }
 0x8a0   :  { %v964_v54 = vmul.f32 %v960_v30, %v932_v53  ;;  %v1127_v30 = vld [vmem:[%s4046_s7 + $0x4] ss:$0 sm:$0xff] }
 0x8a2   :  { %v966_v33 = vpack.c.bf16 %v964_v54, %v962_v63  ;;  %1317 = vmatpush.bf16.msrb.mxu3 %v3008_v41 }
 0x8a4   :  { %1105 = vmatmul.bf16.vlgmr.msrb.gmra.mxu1 %v966_v33 }
 0x8a6   :  { %1318 = vmatpush.bf16.msrb.mxu3 %v3007_v44 }
 0x921   :  { %v1106_v56 = vpop.f32.mrf.mxu1  ;;  %v1120_v37 = vpop.f32.mrf.mxu2 }
 0x922   :  { %v1107_v57 = vadd.f32 %v1106_v56, %v1000_v55  ;;  %v1128_v56 = vld [vmem:[%s4046_s7 + $0x5] ss:$0 sm:$0xff] }
 0x924   :  { %v1121_v58 = vadd.f32 %v1120_v37, %v1107_v57 }
 0x926   :  { %v1125_v59 = vadd.f32 %v1121_v58, %v3556_v50 }
 0x928   :  { %v1129_v60 = vsel %vm273_vm8, %v1125_v59, 0.0 }
 0x929   :  { %v1108_v61 = vpop.f32.mrf.mxu1  ;;  %1130 = vadd.xlane.f32.xlu2 %v1129_v60  ;;  %v1122_v2 = vpop.f32.mrf.mxu2 }
 0x92a   :  { %v1109_v1 = vadd.f32 %v1108_v61, %v1000_v55  ;;  %v3017_v61 = vld [vmem:[%s4042_s3 + $0x150] sm:$0xff] }
 0x92c   :  { %v1123_v3 = vadd.f32 %v1122_v2, %v1109_v1  ;;  %v3016_v1 = vld [vmem:[%s4042_s3 + $0x148] sm:$0xff]  ;;  %v3015_v2 = vld [vmem:[%s4042_s3 + $0x140] sm:$0xff] }
 0x92e   :  { %v1126_v4 = vadd.f32 %v1123_v3, %v3558_v51 }
 0x930   :  { %v1132_v5 = vsel %vm273_vm8, %v1126_v4, 0.0 }
 0x931   :  { %1133 = vadd.xlane.f32.xlu0 %v1132_v5 }
 0x99c   :  { %v1131_v6 = vpop.xlane.xlu2 %1130 }
 0x99d   :  { %v1135_v7 = vmul.f32 %v1131_v6, %v3484_v52 }
 0x99f   :  { %v3623_v8 = vsub.f32 %v1125_v59, %v1135_v7  ;;  %v3018_v59 = vld [vmem:[%s4042_s3 + $0x158] sm:$0xff] }
 0x9a1   :  { %v1139_v50 = vmul.f32 %v3623_v8, %v3623_v8 }
 0x9a3   :  { %v1141_v9 = vsel %vm273_vm8, %v1139_v50, 0.0 }
 0x9a4   :  { %v1134_v10 = vpop.xlane.xlu0 %1133  ;;  %1142 = vadd.xlane.f32.xlu1 %v1141_v9  ;;  %v3022_v9 = vld [vmem:[%s4042_s3 + $0x178] sm:$0xff] }
 0x9a5   :  { %v1136_v11 = vmul.f32 %v1134_v10, %v3484_v52 }
 0x9a7   :  { %v3629_v12 = vsub.f32 %v1126_v4, %v1136_v11  ;;  %v1238_v4 = vld [vmem:[%s4046_s7 + $0x25] ss:$0 sm:$0xff]  ;;  %v1187_v11 = vld [vmem:[%s4046_s7 + $0x24] ss:$0 sm:$0xff] }
 0x9a9   :  { %v1140_v51 = vmul.f32 %v3629_v12, %v3629_v12 }
 0x9ab   :  { %v1144_v13 = vsel %vm273_vm8, %v1140_v51, 0.0 }
 0x9ac   :  { %1145 = vadd.xlane.f32.xlu0 %v1144_v13  ;;  %v3021_v13 = vld [vmem:[%s4042_s3 + $0x170] sm:$0xff]  ;;  %s3202_s3 = smov 256  }
 0xa17   :  { %v1143_v25 = vpop.xlane.xlu1 %1142 }
 0xa18   :  { %v1147_v26 = vmul.f32 %v1143_v25, %v3484_v52 }
 0xa1a   :  { %v1149_v31 = vadd.f32 1e-05, %v1147_v26 }
 0xa1c   :  { %3102 = vrsqrt.f32 %v1149_v31  ;;  %vm1157_vm6 = vweird.f32 %v1149_v31 }
 0xa1f   :  { %v1146_v34 = vpop.xlane.xlu0 %1145 }
 0xa20   :  { %v1148_v0 = vmul.f32 %v1146_v34, %v3484_v52 }
 0xa22   :  { %v3103_v36 = vpop.eup %3102  ;;  %v1150_v38 = vadd.f32 1e-05, %v1148_v0 }
 0xa23   :  { %v1152_v39 = vmul.f32 %v3103_v36, %v1149_v31  ;;  %vm1158_vm5 = vweird.f32 %v3103_v36 }
 0xa24   :  { %3104 = vrsqrt.f32 %v1150_v38  ;;  %vm1159_vm7 = vmor %vm1157_vm6, %vm1158_vm5  ;;  %vm1167_vm12 = vweird.f32 %v1150_v38 }
 0xa25   :  { %v1153_v42 = vmul.f32 %v3103_v36, %v1152_v39  ;;  %v3752_v39 = vld [vmem:[%s4040_s1 + $0x10] sm:$0xff] }
 0xa27   :  { %v1154_v43 = vmul.f32 0.5, %v1153_v42 }
 0xa29   :  { %v1155_v45 = vsub.f32 1.5, %v1154_v43 }
 0xa2a   :  { %v3105_v23 = vpop.eup %3104 }
 0xa2b   :  { %v1156_v22 = vmul.f32 %v3103_v36, %v1155_v45  ;;  %v1162_v46 = vmul.f32 %v3105_v23, %v1150_v38  ;;  %vm1168_vm11 = vweird.f32 %v3105_v23  ;;  %v3759_v45 = vld [vmem:[%s4040_s1 + $0x8] sm:$0xff] }
 0xa2c   :  { %vm1169_vm13 = vmor %vm1167_vm12, %vm1168_vm11 }
 0xa2d   :  { %v1163_v47 = vmul.f32 %v3105_v23, %v1162_v46  ;;  %v1160_v48 = vsel %vm1159_vm7, %v3103_v36, %v1156_v22  ;;  %v3746_v36 = vld [vmem:[%s4040_s1] sm:$0xff] }
 0xa2e   :  { %v1171_v53 = vmul.f32 %v1160_v48, %v3623_v8  ;;  %v1525_v48 = vld [vmem:[%s4046_s7 + $0x31] ss:$0 sm:$0xff] }
 0xa2f   :  { %v1164_v49 = vmul.f32 0.5, %v1163_v47 }
 0xa30   :  { %v1173_v33 = vmul.f32 %v1171_v53, %v1127_v30 }
 0xa31   :  { %v1165_v62 = vsub.f32 1.5, %v1164_v49 }
 0xa32   :  { %v3692_v57 = vadd.f32 %v1173_v33, %v1128_v56 }
 0xa33   :  { %v1166_v63 = vmul.f32 %v3105_v23, %v1165_v62 }
 0xa35   :  { %v1170_v54 = vsel %vm1169_vm13, %v3105_v23, %v1166_v63 }
 0xa36   :  { %v1172_v55 = vmul.f32 %v1170_v54, %v3629_v12 }
 0xa38   :  { %v1174_v37 = vmul.f32 %v1172_v55, %v1127_v30 }
 0xa3a   :  { %v3694_v58 = vadd.f32 %v1174_v37, %v1128_v56 }
 0xa3c   :  { %v1177_v60 = vpack.c.bf16 %v3694_v58, %v3692_v57 }
 0xa3e   :  { %2634 = vmatmul.msk.bf16.vlgmr.msra.gmra.mxu3 %vm273_vm8, %v1177_v60  ;;  %2659 = vmatmul.msk.bf16.vlgmr.msra.gmra.mxu0 %vm273_vm8, %v1177_v60 }
 0xa3f   :  { %2711 = vmatmul.msk.bf16.vlgmr.msrb.gmra.mxu2 %vm273_vm8, %v1177_v60  ;;  %1506 = vmatpush.bf16.msra.mxu3 %v3018_v59 }
 0xa43   :  { %1507 = vmatpush.bf16.msra.mxu3 %v3017_v61 }
 0xa47   :  { %1508 = vmatpush.bf16.msra.mxu3 %v3016_v1 }
 0xa4b   :  { %1509 = vmatpush.bf16.msra.mxu3 %v3015_v2 }
 0xa4e   :  { %2684 = vmatmul.msk.bf16.vlgmr.msrb.gmra.mxu3 %vm273_vm8, %v1177_v60 }
 0xa5e   :  { %2736 = vmatmul.msk.bf16.vlgmr.msra.gmra.mxu3 %vm273_vm8, %v1177_v60 }
 0xabb   :  { %v1272_v3 = vpop.f32.mrf.mxu0 }
 0xabc   :  { %v1273_v7 = vadd.f32 %v1272_v3, %v1238_v4 }
 0xac1   :  { %v1224_v5 = vpop.f32.mrf.mxu3 }
 0xac2   :  { %v1225_v14 = vadd.f32 %v1224_v5, %v1187_v11 }
 0xac3   :  { %v1274_v6 = vpop.f32.mrf.mxu0 }
 0xac4   :  { %v1275_v8 = vadd.f32 %v1274_v6, %v1238_v4 }
 0xac6   :  { %v1326_v50 = vpack.c.bf16 %v1275_v8, %v1273_v7 }
 0xac8   :  { %v1331_v10 = vsel %vm389_vm9, %v1326_v50, 0 }
 0xac9   :  { %v1226_v12 = vpop.f32.mrf.mxu3  ;;  %1340 = vmatpush.bf16.xpose.msrb.mxu0 %v1331_v10 }
 0xaca   :  { %v1227_v51 = vadd.f32 %v1226_v12, %v1187_v11 }
 0xacc   :  { %v1325_v15 = vpack.c.bf16 %v1227_v51, %v1225_v14 }
 0xad0   :  { %2685 = vmatmul.msk.bf16.vlgmr.msrb.gmra.mxu0 %vm389_vm9, %v1325_v15 }
 0xad1   :  { %1554 = vmatpush.bf16.msra.mxu0 %v3022_v9  ;;  %v1320_v17 = vpop.f32.mrf.mxu3 }
 0xad2   :  { %v1321_v21 = vadd.f32 %v1320_v17, %v1286_v19 }
 0xad5   :  { %1555 = vmatpush.bf16.msra.mxu0 %v3021_v13 }
 0xad9   :  { %1556 = vmatpush.bf16.msra.mxu0 %v3020_v16  ;;  %v1322_v20 = vpop.f32.mrf.mxu3 }
 0xada   :  { %v1323_v24 = vadd.f32 %v1322_v20, %v1286_v19 }
 0xadc   :  { %v1402_v25 = vpack.c.bf16 %v1323_v24, %v1321_v21 }
 0xadd   :  { %1557 = vmatpush.bf16.msra.mxu0 %v3019_v18 }
 0xade   :  { %1413 = vmatpush.bf16.msra.mxu1 %v1402_v25  ;;  %v1463_v25 = vpop.f32.mrf.mxu2 }
 0xae0   :  { %2761 = vmatmul.msk.bf16.vlgmr.msra.gmra.mxu0 %vm273_vm8, %v1177_v60 }
 0xae1   :  { %v1511_v26 = vpop.f32.mrf.mxu3 }
 0xae2   :  { %v1512_v29 = vadd.f32 %v1511_v26, %v1477_v27 }
 0xae9   :  { %v1513_v28 = vpop.f32.mrf.mxu3 }
 0xaea   :  { %v1514_v31 = vadd.f32 %v1513_v28, %v1477_v27  ;;  %v1465_v27 = vpop.f32.mrf.mxu2  ;;  %v1429_v28 = vld [vmem:[%s4046_s7 + $0x27] ss:$0 sm:$0xff] }
 0xaec   :  { %v1565_v32 = vpack.c.bf16 %v1514_v31, %v1512_v29  ;;  %v1466_v29 = vadd.f32 %v1465_v27, %v1429_v28  ;;  %v1464_v31 = vadd.f32 %v1463_v25, %v1429_v28  ;;  %v3023_v25 = vld [vmem:[%s4043_s4 + $0x20] sm:$0xff] }
 0xaee   :  { %v1570_v34 = vsel %vm389_vm9, %v1565_v32, 0  ;;  %v1564_v32 = vpack.c.bf16 %v1466_v29, %v1464_v31 }
 0xaef   :  { %1579 = vmatpush.bf16.xpose.msrb.mxu1 %v1570_v34 }
 0xb4d   :  { %v1342_v0 = vpop.f32.mrf.mxu0 }
 0xb4e   :  { %v1347_v35 = vmul.f32 0.17677669, %v1342_v0 }
 0xb50   :  { %v1349_v38 = vmul.f32 %v3746_v36, %v1347_v35 }
 0xb52   :  { %v1351_v41 = vadd.f32 %v3752_v39, %v1349_v38 }
 0xb54   :  { %v1353_v42 = vsel %vm416_vm10, %v1351_v41, -inf }
 0xb55   :  { %1354 = vmax.xlane.f32.xlu1 %v1353_v42  ;;  %v1344_v43 = vpop.f32.mrf.mxu0 }
 0xb56   :  { %v1348_v44 = vmul.f32 0.17677669, %v1344_v43 }
 0xb58   :  { %v1350_v23 = vmul.f32 %v3759_v45, %v1348_v44 }
 0xb5a   :  { %v1352_v22 = vadd.f32 %v3416_v40, %v1350_v23 }
 0xb5c   :  { %v1356_v46 = vsel %vm416_vm10, %v1352_v22, -inf }
 0xb5d   :  { %v1559_v47 = vpop.f32.mrf.mxu0  ;;  %1357 = vmax.xlane.f32.xlu0 %v1356_v46  ;;  %v3153_v46 = vld [vmem:[%s4040_s1 + $0x18] sm:$0xff] }
 0xb5e   :  { %v1560_v62 = vadd.f32 %v1559_v47, %v1525_v48 }
 0xb65   :  { %v1561_v49 = vpop.f32.mrf.mxu0 }
 0xb66   :  { %v1562_v53 = vadd.f32 %v1561_v49, %v1525_v48 }
 0xb68   :  { %v1641_v30 = vpack.c.bf16 %v1562_v53, %v1560_v62 }
 0xb6a   :  { %1652 = vmatpush.bf16.msra.mxu2 %v1641_v30 }
 0xbc8   :  { %v1355_v63 = vpop.xlane.xlu1 %1354 }
 0xbc9   :  { %v1359_v54 = vsub.f32 %v1351_v41, %v1355_v63 }
 0xbcb   :  { %v1361_v33 = vmul.f32 1.442695, %v1359_v54 }
 0xbcd   :  { %3106 = vpow2.f32 %v1361_v33 }
 0xbd0   :  { %v1358_v55 = vpop.xlane.xlu0 %1357 }
 0xbd1   :  { %v1360_v56 = vsub.f32 %v1352_v22, %v1358_v55 }
 0xbd3   :  { %v3107_v40 = vpop.eup %3106  ;;  %v1363_v37 = vmul.f32 1.442695, %v1360_v56 }
 0xbd4   :  { %v1365_v59 = vsel %vm416_vm10, %v3107_v40, 0.0 }
 0xbd5   :  { %3108 = vpow2.f32 %v1363_v37  ;;  %1366 = vadd.xlane.f32.xlu1 %v1365_v59 }
 0xbdb   :  { %v3109_v60 = vpop.eup %3108 }
 0xbdc   :  { %v1368_v61 = vsel %vm416_vm10, %v3109_v60, 0.0 }
 0xbdd   :  { %1369 = vadd.xlane.f32.xlu0 %v1368_v61 }
 0xc48   :  { %v1367_v1 = vpop.xlane.xlu1 %1366 }
 0xc49   :  { %3110 = vrcp.f32 %v1367_v1  ;;  %v1382_v9 = vand.u32 2147483648, %v1367_v1  ;;  %vm1376_vm15 = vweird.f32 %v1367_v1  ;;  %v1380_v10 = vand.u32 2147483647, %v1367_v1 }
 0xc4b   :  { %v1383_v15 = vor.u32 1.1754944e-38, %v1382_v9  ;;  %vm1381_vm2 = vcmp.eq.f32.partialorder %v1380_v10, 8.507059e+37 }
 0xc4f   :  { %v3111_v2 = vpop.eup %3110 }
 0xc50   :  { %v1372_v3 = vmul.f32 %v3111_v2, %v1367_v1  ;;  %v1370_v4 = vpop.xlane.xlu0 %1369  ;;  %vm1377_vm14 = vweird.f32 %v3111_v2 }
 0xc51   :  { %3112 = vrcp.f32 %v1370_v4  ;;  %vm1378_vm0 = vmor %vm1376_vm15, %vm1377_vm14  ;;  %v1397_v12 = vand.u32 2147483648, %v1370_v4  ;;  %v1395_v14 = vand.u32 2147483647, %v1370_v4  ;;  %vm1391_vm3 = vweird.f32 %v1370_v4 }
 0xc52   :  { %v1373_v5 = vsub.f32 1.0, %v1372_v3 }
 0xc53   :  { %v1398_v18 = vor.u32 1.1754944e-38, %v1397_v12  ;;  %vm1396_vm5 = vcmp.eq.f32.partialorder %v1395_v14, 8.507059e+37 }
 0xc54   :  { %v1374_v6 = vmul.f32 %v3111_v2, %v1373_v5 }
 0xc56   :  { %v1375_v8 = vadd.f32 %v3111_v2, %v1374_v6 }
 0xc57   :  { %v3113_v7 = vpop.eup %3112 }
 0xc58   :  { %v1387_v50 = vmul.f32 %v3113_v7, %v1370_v4  ;;  %v1379_v51 = vsel %vm1378_vm0, %v3111_v2, %v1375_v8  ;;  %vm1392_vm1 = vweird.f32 %v3113_v7 }
 0xc59   :  { %v1384_v17 = vsel %vm1381_vm2, %v1383_v15, %v1379_v51  ;;  %vm1393_vm4 = vmor %vm1391_vm3, %vm1392_vm1 }
 0xc5a   :  { %v1388_v11 = vsub.f32 1.0, %v1387_v50  ;;  %v1385_v21 = vmul.f32 %v3107_v40, %v1384_v17  ;;  %v3026_v17 = vld [vmem:[%s4043_s4 + $0x38] sm:$0xff] }
 0xc5b   :  { %1711 = vmatpush.bf16.msrb.mxu3 %v3026_v17 }
 0xc5c   :  { %v1389_v13 = vmul.f32 %v3113_v7, %v1388_v11 }
 0xc5e   :  { %v1390_v16 = vadd.f32 %v3113_v7, %v1389_v13 }
 0xc60   :  { %v1394_v19 = vsel %vm1393_vm4, %v3113_v7, %v1390_v16 }
 0xc61   :  { %v1399_v20 = vsel %vm1396_vm5, %v1398_v18, %v1394_v19  ;;  %v3025_v18 = vld [vmem:[%s4043_s4 + $0x30] sm:$0xff]  ;;  %v3024_v19 = vld [vmem:[%s4043_s4 + $0x28] sm:$0xff] }
 0xc62   :  { %v1400_v24 = vmul.f32 %v3109_v60, %v1399_v20  ;;  %1712 = vmatpush.bf16.msrb.mxu3 %v3025_v18 }
 0xc64   :  { %v1401_v26 = vpack.c.bf16 %v1400_v24, %v1385_v21 }
 0xc66   :  { %2686 = vmatmul.msk.bf16.vlgmr.msra.gmra.mxu1 %vm416_vm10, %v1401_v26  ;;  %1713 = vmatpush.bf16.msrb.mxu3 %v3024_v19 }
 0xc6a   :  { %1714 = vmatpush.bf16.msrb.mxu3 %v3023_v25 }
 0xc76   :  { %2762 = vmatmul.msk.bf16.vlgmr.msrb.gmra.mxu1 %vm389_vm9, %v1564_v32 }
 0xce3   :  { %v3774_v34 = vpop.f32.mrf.mxu1 }
 0xceb   :  { %v3776_v0 = vpop.f32.mrf.mxu1 }
 0xcf3   :  { %v1581_v35 = vpop.f32.mrf.mxu1 }
 0xcf4   :  { %v1586_v38 = vmul.f32 0.17677669, %v1581_v35  ;;  %v1679_v35 = vld [vmem:[%s4046_s7 + $0x15] ss:$0 sm:$0xff] }
 0xcf6   :  { %v1588_v41 = vmul.f32 %v3746_v36, %v1586_v38 }
 0xcf8   :  { %v1590_v42 = vadd.f32 %v3752_v39, %v1588_v41 }
 0xcfa   :  { %v1592_v43 = vsel %vm416_vm10, %v1590_v42, -inf }
 0xcfb   :  { %1593 = vmax.xlane.f32.xlu1 %v1592_v43  ;;  %v1583_v44 = vpop.f32.mrf.mxu1 }
 0xcfc   :  { %v1587_v23 = vmul.f32 0.17677669, %v1583_v44 }
 0xcfe   :  { %v1589_v22 = vmul.f32 %v3759_v45, %v1587_v23 }
 0xd00   :  { %v1591_v47 = vadd.f32 %v3153_v46, %v1589_v22 }
 0xd02   :  { %v1595_v48 = vsel %vm416_vm10, %v1591_v47, -inf }
 0xd03   :  { %1596 = vmax.xlane.f32.xlu0 %v1595_v48 }
 0xd6e   :  { %v1594_v49 = vpop.xlane.xlu1 %1593 }
 0xd6f   :  { %v1598_v62 = vsub.f32 %v1590_v42, %v1594_v49 }
 0xd71   :  { %v1600_v36 = vmul.f32 1.442695, %v1598_v62 }
 0xd73   :  { %3114 = vpow2.f32 %v1600_v36 }
 0xd76   :  { %v1597_v39 = vpop.xlane.xlu0 %1596 }
 0xd77   :  { %v1599_v53 = vsub.f32 %v1591_v47, %v1597_v39 }
 0xd79   :  { %v3115_v30 = vpop.eup %3114  ;;  %v1602_v63 = vmul.f32 1.442695, %v1599_v53  ;;  %v2824_v53 = vld [vmem:[%s4044_s5 + $0x70] sm:$0xf] }
 0xd7a   :  { %v1604_v54 = vsel %vm416_vm10, %v3115_v30, 0.0 }
 0xd7b   :  { %3116 = vpow2.f32 %v1602_v63  ;;  %1605 = vadd.xlane.f32.xlu1 %v1604_v54  ;;  %v3033_v63 = vld [vmem:[%s4044_s5 + $0x74] sm:$0xf] }
 0xd81   :  { %v3117_v45 = vpop.eup %3116 }
 0xd82   :  { %v1607_v33 = vsel %vm416_vm10, %v3117_v45, 0.0 }
 0xd83   :  { %1608 = vadd.xlane.f32.xlu2 %v1607_v33 }
 0xdee   :  { %v1606_v55 = vpop.xlane.xlu1 %1605 }
 0xdef   :  { %3118 = vrcp.f32 %v1606_v55  ;;  %v1621_v3 = vand.u32 2147483648, %v1606_v55  ;;  %vm1615_vm7 = vweird.f32 %v1606_v55  ;;  %v1619_v4 = vand.u32 2147483647, %v1606_v55 }
 0xdf1   :  { %v1622_v9 = vor.u32 1.1754944e-38, %v1621_v3  ;;  %vm1620_vm13 = vcmp.eq.f32.partialorder %v1619_v4, 8.507059e+37  ;;  %v2810_v4 = vld [vmem:[%s4044_s5 + $0x58] sm:$0xf0] }
 0xdf5   :  { %v3119_v56 = vpop.eup %3118 }
 0xdf6   :  { %v1611_v40 = vmul.f32 %v3119_v56, %v1606_v55  ;;  %v1609_v37 = vpop.xlane.xlu2 %1608  ;;  %vm1616_vm6 = vweird.f32 %v3119_v56  ;;  %v2816_v55 = vld [vmem:[%s4044_s5 + $0x60] sm:$0xf] }
 0xdf7   :  { %3120 = vrcp.f32 %v1609_v37  ;;  %vm1617_vm11 = vmor %vm1615_vm7, %vm1616_vm6  ;;  %v1636_v6 = vand.u32 2147483648, %v1609_v37  ;;  %v1634_v50 = vand.u32 2147483647, %v1609_v37  ;;  %vm1630_vm14 = vweird.f32 %v1609_v37 }
 0xdf8   :  { %v1612_v59 = vsub.f32 1.0, %v1611_v40  ;;  %v3031_v40 = vld [vmem:[%s4044_s5 + $0x64] sm:$0xf] }
 0xdf9   :  { %v1637_v12 = vor.u32 1.1754944e-38, %v1636_v6  ;;  %vm1635_vm0 = vcmp.eq.f32.partialorder %v1634_v50, 8.507059e+37  ;;  %v3028_v50 = vld [vmem:[%s4044_s5 + $0x44] sm:$0xf0] }
 0xdfa   :  { %v1613_v60 = vmul.f32 %v3119_v56, %v1612_v59  ;;  %v2818_v59 = vld [vmem:[%s4044_s5 + $0x68] sm:$0xf0] }
 0xdfc   :  { %v1614_v1 = vadd.f32 %v3119_v56, %v1613_v60  ;;  %v2821_v60 = vor.u32 %v3031_v40, %v2818_v59 }
 0xdfd   :  { %v3121_v61 = vpop.eup %3120 }
 0xdfe   :  { %v1626_v2 = vmul.f32 %v3121_v61, %v1609_v37  ;;  %v1618_v7 = vsel %vm1617_vm11, %v3119_v56, %v1614_v1  ;;  %vm1631_vm12 = vweird.f32 %v3121_v61  ;;  %v3032_v56 = vld [vmem:[%s4044_s5 + $0x64] sm:$0xf0]  ;;  %v3030_v1 = vld [vmem:[%s4044_s5 + $0x54] sm:$0xf0] }
 0xdff   :  { %v1623_v11 = vsel %vm1620_vm13, %v1622_v9, %v1618_v7  ;;  %vm1632_vm15 = vmor %vm1630_vm14, %vm1631_vm12  ;;  %v2817_v37 = vor.u32 %v3032_v56, %v2816_v55  ;;  %v3027_v9 = vld [vmem:[%s4044_s5 + $0x44] sm:$0xf] }
 0xe00   :  { %v1627_v5 = vsub.f32 1.0, %v1626_v2  ;;  %v1624_v14 = vmul.f32 %v3115_v30, %v1623_v11  ;;  %v3034_v30 = vld [vmem:[%s4044_s5 + $0x74] sm:$0xf0]  ;;  %v3029_v2 = vld [vmem:[%s4044_s5 + $0x54] sm:$0xf]  ;;  %v3043_v55 = vld [vmem:[%s4045_s6 + $0xc0] sm:$0xff] }
 0xe01   :  { %v2825_v54 = vor.u32 %v3034_v30, %v2824_v53  ;;  %v2813_v6 = vor.u32 %v3029_v2, %v2810_v4  ;;  %v3037_v53 = vld [vmem:[%s4045_s6 + $0x90] sm:$0xff] }
 0xe02   :  { %v1628_v8 = vmul.f32 %v3121_v61, %v1627_v5  ;;  %v3045_v30 = vld [vmem:[%s4045_s6 + $0xd0] sm:$0xff] }
 0xe03   :  { %1837 = vmatpush.bf16.msrb.mxu0 %v2825_v54  ;;  %v3044_v54 = vld [vmem:[%s4045_s6 + $0xc8] sm:$0xff] }
 0xe04   :  { %v1629_v10 = vadd.f32 %v3121_v61, %v1628_v8  ;;  %v2800_v8 = vld [vmem:[%s4044_s5 + $0x40] sm:$0xf] }
 0xe05   :  { %v2801_v11 = vor.u32 %v3028_v50, %v2800_v8 }
 0xe06   :  { %v1633_v51 = vsel %vm1632_vm15, %v3121_v61, %v1629_v10  ;;  %v2808_v61 = vld [vmem:[%s4044_s5 + $0x50] sm:$0xf] }
 0xe07   :  { %v1638_v13 = vsel %vm1635_vm0, %v1637_v12, %v1633_v51  ;;  %1838 = vmatpush.bf16.msrb.mxu0 %v2817_v37  ;;  %v2809_v3 = vor.u32 %v3030_v1, %v2808_v61  ;;  %v2802_v12 = vld [vmem:[%s4044_s5 + $0x48] sm:$0xf0] }
 0xe08   :  { %v1639_v15 = vmul.f32 %v3117_v45, %v1638_v13  ;;  %v2826_v45 = vld [vmem:[%s4044_s5 + $0x78] sm:$0xf0]  ;;  %v2805_v51 = vor.u32 %v3027_v9, %v2802_v12 }
 0xe09   :  { %v2829_v33 = vor.u32 %v3033_v63, %v2826_v45  ;;  %v3036_v63 = vld [vmem:[%s4045_s6 + $0x88] sm:$0xff] }
 0xe0a   :  { %v1640_v16 = vpack.c.bf16 %v1639_v15, %v1624_v14  ;;  %v2797_v45 = vld [vmem:[%s4046_s7 + $0x23] ss:$8 sm:$0x3] }
 0xe0b   :  { %1851 = vmatpush.bf16.msra.mxu1 %v2829_v33  ;;  %1839 = vmatpush.bf16.msrb.mxu0 %v2809_v3  ;;  %v3035_v33 = vld [vmem:[%s4045_s6 + $0x80] sm:$0xff]  ;;  %v1786_v56 = vperm.slane %v2797_v45, 0  ;;  %v1787_v40 = vperm.slane %v2797_v45, 1 }
 0xe0c   :  { %2763 = vmatmul.msk.bf16.vlgmr.msra.gmra.mxu2 %vm416_vm10, %v1640_v16 }
 0xe0f   :  { %1852 = vmatpush.bf16.msra.mxu1 %v2821_v60  ;;  %1840 = vmatpush.bf16.msrb.mxu0 %v2801_v11 }
 0xe13   :  { %1853 = vmatpush.bf16.msra.mxu1 %v2813_v6 }
 0xe17   :  { %1854 = vmatpush.bf16.msra.mxu1 %v2805_v51 }
 0xe8f   :  { %v1654_v20 = vpop.f32.mrf.mxu2 }
 0xe97   :  { %v1656_v21 = vpop.f32.mrf.mxu2 }
 0xe98   :  { %v3066_v24 = vpack.i.bf16 %v1656_v21, %v1654_v20 }
 0xe9a   :  { %3067 = vrot.lane.b32.xlu0 %v3066_v24, %s3199_s23 }
 0xf0c   :  { %v3068_v26 = vpop.permute.xlu0 %3067 }
 0xf0d   :  { %v3070_v27 = vunpack.i.h.bf16 %v3068_v26  ;;  %v3069_v28 = vunpack.i.l.bf16 %v3068_v26 }
 0xf0f   :  { %v1668_v29 = vsel %vm389_vm9, %v3776_v0, %v3070_v27  ;;  %v1667_v31 = vsel %vm389_vm9, %v3774_v34, %v3069_v28 }
 0xf10   :  { %v1669_v32 = vpack.c.bf16 %v1668_v29, %v1667_v31 }
 0xf12   :  { %2788 = vmatmul.msk.bf16.vlgmr.msrb.gmra.mxu3 %vm273_vm8, %v1669_v32  ;;  %v1723_v32 = vld [vmem:[%s4046_s7 + $0x16] ss:$0 sm:$0xff] }
 0xf95   :  { %v1716_v38 = vpop.f32.mrf.mxu3 }
 0xf96   :  { %v1717_v41 = vadd.f32 %v1716_v38, %v1679_v35 }
 0xf98   :  { %v1721_v42 = vadd.f32 %v1717_v41, %v3692_v57 }
 0xf9a   :  { %v1725_v43 = vsel %vm273_vm8, %v1721_v42, 0.0 }
 0xf9b   :  { %1726 = vadd.xlane.f32.xlu1 %v1725_v43  ;;  %v1724_v43 = vld [vmem:[%s4046_s7 + $0x17] ss:$0 sm:$0xff] }
 0xf9d   :  { %v1718_v44 = vpop.f32.mrf.mxu3 }
 0xf9e   :  { %v1719_v23 = vadd.f32 %v1718_v44, %v1679_v35 }
 0xfa0   :  { %v1722_v0 = vadd.f32 %v1719_v23, %v3694_v58 }
 0xfa2   :  { %v1728_v34 = vsel %vm273_vm8, %v1722_v0, 0.0 }
 0xfa3   :  { %1729 = vadd.xlane.f32.xlu2 %v1728_v34 }
0x100e   :  { %v1727_v22 = vpop.xlane.xlu1 %1726 }
0x100f   :  { %v1731_v46 = vmul.f32 %v1727_v22, %v3484_v52  ;;  %v3042_v22 = vld [vmem:[%s4045_s6 + $0xb8] sm:$0xff] }
0x1010   :  { %2029 = vmatpush.bf16.msrb.mxu2 %v3042_v22 }
0x1011   :  { %v3815_v47 = vsub.f32 %v1721_v42, %v1731_v46  ;;  %v3050_v46 = vld [vmem:[%s4045_s6 + $0xf8] sm:$0xff] }
0x1012   :  { %2043 = vmatpush.bf16.msra.mxu3 %v3050_v46 }
0x1013   :  { %v1735_v48 = vmul.f32 %v3815_v47, %v3815_v47 }
0x1015   :  { %v1737_v57 = vsel %vm273_vm8, %v1735_v48, 0.0  ;;  %v3049_v48 = vld [vmem:[%s4045_s6 + $0xf0] sm:$0xff] }
0x1016   :  { %v1730_v49 = vpop.xlane.xlu2 %1729  ;;  %1738 = vadd.xlane.f32.xlu1 %v1737_v57  ;;  %2044 = vmatpush.bf16.msra.mxu3 %v3049_v48  ;;  %v3040_v57 = vld [vmem:[%s4045_s6 + $0xa8] sm:$0xff] }
0x1017   :  { %v1732_v62 = vmul.f32 %v1730_v49, %v3484_v52  ;;  %v3048_v49 = vld [vmem:[%s4045_s6 + $0xe8] sm:$0xff] }
0x1019   :  { %v3821_v36 = vsub.f32 %v1722_v0, %v1732_v62  ;;  %v3039_v62 = vld [vmem:[%s4045_s6 + $0xa0] sm:$0xff] }
0x101a   :  { %2045 = vmatpush.bf16.msra.mxu3 %v3048_v49 }
0x101b   :  { %v1736_v58 = vmul.f32 %v3821_v36, %v3821_v36 }
0x101d   :  { %v1740_v39 = vsel %vm273_vm8, %v1736_v58, 0.0  ;;  %v3038_v58 = vld [vmem:[%s4045_s6 + $0x98] sm:$0xff] }
0x101e   :  { %1741 = vadd.xlane.f32.xlu2 %v1740_v39  ;;  %v3046_v39 = vld [vmem:[%s4045_s6 + $0xd8] sm:$0xff] }
0x1089   :  { %v1739_v5 = vpop.xlane.xlu1 %1738 }
0x108a   :  { %v1743_v7 = vmul.f32 %v1739_v5, %v3484_v52 }
0x108c   :  { %v1745_v10 = vadd.f32 1e-05, %v1743_v7 }
0x108e   :  { %3122 = vrsqrt.f32 %v1745_v10  ;;  %vm1753_vm10 = vweird.f32 %v1745_v10 }
0x1091   :  { %v1742_v13 = vpop.xlane.xlu2 %1741 }
0x1092   :  { %v1744_v14 = vmul.f32 %v1742_v13, %v3484_v52 }
0x1094   :  { %v3123_v15 = vpop.eup %3122  ;;  %v1746_v16 = vadd.f32 1e-05, %v1744_v14 }
0x1095   :  { %v1748_v17 = vmul.f32 %v3123_v15, %v1745_v10  ;;  %vm1754_vm9 = vweird.f32 %v3123_v15 }
0x1096   :  { %3124 = vrsqrt.f32 %v1746_v16  ;;  %vm1755_vm1 = vmor %vm1753_vm10, %vm1754_vm9  ;;  %vm1763_vm3 = vweird.f32 %v1746_v16 }
0x1097   :  { %v1749_v18 = vmul.f32 %v3123_v15, %v1748_v17 }
0x1099   :  { %v1750_v19 = vmul.f32 0.5, %v1749_v18 }
0x109b   :  { %v1751_v20 = vsub.f32 1.5, %v1750_v19 }
0x109c   :  { %v3125_v21 = vpop.eup %3124 }
0x109d   :  { %v1752_v24 = vmul.f32 %v3123_v15, %v1751_v20  ;;  %v1758_v25 = vmul.f32 %v3125_v21, %v1746_v16  ;;  %vm1764_vm2 = vweird.f32 %v3125_v21 }
0x109e   :  { %vm1765_vm4 = vmor %vm1763_vm3, %vm1764_vm2 }
0x109f   :  { %v1759_v26 = vmul.f32 %v3125_v21, %v1758_v25  ;;  %v1756_v27 = vsel %vm1755_vm1, %v3123_v15, %v1752_v24 }
0x10a0   :  { %v1767_v31 = vmul.f32 %v1756_v27, %v3815_v47  ;;  %v3041_v47 = vld [vmem:[%s4045_s6 + $0xb0] sm:$0xff] }
0x10a1   :  { %v1760_v28 = vmul.f32 0.5, %v1759_v26  ;;  %2030 = vmatpush.bf16.msrb.mxu2 %v3041_v47 }
0x10a2   :  { %v1769_v41 = vmul.f32 %v1767_v31, %v1723_v32 }
0x10a3   :  { %v1761_v29 = vsub.f32 1.5, %v1760_v28 }
0x10a4   :  { %v3884_v23 = vadd.f32 %v1769_v41, %v1724_v43 }
0x10a5   :  { %v1762_v35 = vmul.f32 %v3125_v21, %v1761_v29  ;;  %2031 = vmatpush.bf16.msrb.mxu2 %v3040_v57  ;;  %v1932_v57 = vld [vmem:[%s4046_s7 + $0x20] ss:$0 sm:$0xff] }
0x10a7   :  { %v1766_v38 = vsel %vm1765_vm4, %v3125_v21, %v1762_v35 }
0x10a8   :  { %v1768_v42 = vmul.f32 %v1766_v38, %v3821_v36  ;;  %v3047_v36 = vld [vmem:[%s4045_s6 + $0xe0] sm:$0xff] }
0x10a9   :  { %2032 = vmatpush.bf16.msrb.mxu2 %v3039_v62  ;;  %2046 = vmatpush.bf16.msra.mxu3 %v3047_v36 }
0x10aa   :  { %v1770_v44 = vmul.f32 %v1768_v42, %v1723_v32 }
0x10ac   :  { %v3886_v0 = vadd.f32 %v1770_v44, %v1724_v43 }
0x10ad   :  { %2033 = vmatpush.bf16.msrb.mxu2 %v3038_v58  ;;  %2047 = vmatpush.bf16.msra.mxu3 %v3046_v39 }
0x10ae   :  { %v1773_v34 = vpack.c.bf16 %v3886_v0, %v3884_v23 }
0x10b0   :  { %2830 = vmatmul.msk.bf16.vlgmr.msrb.gmra.mxu0 %vm273_vm8, %v1773_v34  ;;  %2831 = vmatmul.msk.bf16.vlgmr.msra.gmra.mxu1 %vm273_vm8, %v1773_v34 }
0x10b1   :  { %2034 = vmatpush.bf16.msrb.mxu2 %v3037_v53  ;;  %2048 = vmatpush.bf16.msra.mxu3 %v3045_v30 }
0x10b5   :  { %2035 = vmatpush.bf16.msrb.mxu2 %v3036_v63  ;;  %2049 = vmatpush.bf16.msra.mxu3 %v3044_v54 }
0x10b9   :  { %2036 = vmatpush.bf16.msrb.mxu2 %v3035_v33  ;;  %2050 = vmatpush.bf16.msra.mxu3 %v3043_v55 }
0x112d   :  { %v1842_v37 = vpop.f32.mrf.mxu0  ;;  %v1856_v59 = vpop.f32.mrf.mxu1 }
0x112e   :  { %v1843_v60 = vadd.f32 %v1842_v37, %v1786_v56  ;;  %v1857_v61 = vadd.f32 %v1856_v59, %v1787_v40 }
0x1130   :  { %v1865_v1 = vmul.f32 0.044715, %v1843_v60  ;;  %v1866_v2 = vmul.f32 0.044715, %v1857_v61  ;;  %v1861_v32 = vmul.f32 0.5, %v1843_v60  ;;  %v1862_v41 = vmul.f32 0.5, %v1857_v61 }
0x1132   :  { %v1869_v3 = vmul.f32 %v1865_v1, %v1843_v60  ;;  %v1870_v4 = vmul.f32 %v1866_v2, %v1857_v61  ;;  %v3158_v1 = vld [vmem:[%s4041_s2 + $0x28] sm:$0xff] }
0x1133   :  { %v2136_v2 = vsel %vm273_vm8, %v3158_v1, 0 }
0x1134   :  { %v1873_v5 = vmul.f32 %v1869_v3, %v1843_v60  ;;  %v1874_v6 = vmul.f32 %v1870_v4, %v1857_v61  ;;  %v3159_v3 = vld [vmem:[%s4041_s2 + $0x68] sm:$0xff] }
0x1135   :  { %v1844_v7 = vpop.f32.mrf.mxu0  ;;  %v1858_v8 = vpop.f32.mrf.mxu1  ;;  %v2160_v4 = vsel %vm273_vm8, %v3159_v3, 0 }
0x1136   :  { %v1877_v50 = vadd.f32 %v1873_v5, %v1843_v60  ;;  %v1845_v9 = vadd.f32 %v1844_v7, %v1786_v56  ;;  %v1859_v10 = vadd.f32 %v1858_v8, %v1787_v40  ;;  %v1878_v11 = vadd.f32 %v1874_v6, %v1857_v61  ;;  %v3154_v56 = vld [vmem:[%s4041_s2 + $0x38] sm:$0xff]  ;;  %v3157_v60 = vld [vmem:[%s4041_s2 + $0x70] sm:$0xff] }
0x1137   :  { %v2142_v40 = vsel %vm273_vm8, %v3154_v56, 0  ;;  %v2163_v61 = vsel %vm273_vm8, %v3157_v60, 0 }
0x1138   :  { %v1867_v12 = vmul.f32 0.044715, %v1845_v9  ;;  %v1868_v51 = vmul.f32 0.044715, %v1859_v10  ;;  %v1881_v13 = vmul.f32 0.7978846, %v1877_v50  ;;  %2168 = vmatpush.bf16.xpose.msra.mxu0 %v2142_v40 }
0x1139   :  { %v1882_v15 = vmul.f32 0.7978846, %v1878_v11  ;;  %v1863_v35 = vmul.f32 0.5, %v1845_v9  ;;  %v1864_v42 = vmul.f32 0.5, %v1859_v10  ;;  %v3160_v50 = vld [vmem:[%s4041_s2 + $0x20] sm:$0xff] }
0x113a   :  { %v1871_v14 = vmul.f32 %v1867_v12, %v1845_v9  ;;  %v1872_v16 = vmul.f32 %v1868_v51, %v1859_v10  ;;  %3126 = vtanh.f32 %v1881_v13 }
0x113b   :  { %3128 = vtanh.f32 %v1882_v15 }
0x113c   :  { %v1875_v17 = vmul.f32 %v1871_v14, %v1845_v9  ;;  %v1876_v18 = vmul.f32 %v1872_v16, %v1859_v10 }
0x113e   :  { %v1879_v19 = vadd.f32 %v1875_v17, %v1845_v9  ;;  %v1880_v20 = vadd.f32 %v1876_v18, %v1859_v10  ;;  %v2133_v9 = vsel %vm273_vm8, %v3160_v50, 0  ;;  %v3161_v10 = vld [vmem:[%s4041_s2 + $0x60] sm:$0xff]  ;;  %v3162_v17 = vld [vmem:[%s4041_s2 + $0x18] sm:$0xff] }
0x113f   :  { %v2157_v11 = vsel %vm273_vm8, %v3161_v10, 0  ;;  %v2130_v18 = vsel %vm273_vm8, %v3162_v17, 0 }
0x1140   :  { %v1883_v21 = vmul.f32 0.7978846, %v1879_v19  ;;  %v1884_v24 = vmul.f32 0.7978846, %v1880_v20  ;;  %v3127_v25 = vpop.eup %3126  ;;  %v3163_v19 = vld [vmem:[%s4041_s2 + $0x58] sm:$0xff] }
0x1141   :  { %v3129_v26 = vpop.eup %3128  ;;  %v1889_v27 = vadd.f32 1.0, %v3127_v25  ;;  %v2154_v20 = vsel %vm273_vm8, %v3163_v19, 0  ;;  %v3165_v25 = vld [vmem:[%s4041_s2 + $0x50] sm:$0xff] }
0x1142   :  { %3130 = vtanh.f32 %v1883_v21  ;;  %v1890_v29 = vadd.f32 1.0, %v3129_v26  ;;  %v3164_v21 = vld [vmem:[%s4041_s2 + $0x10] sm:$0xff]  ;;  %v2151_v26 = vsel %vm273_vm8, %v3165_v25, 0 }
0x1143   :  { %3132 = vtanh.f32 %v1884_v24  ;;  %v1893_v44 = vmul.f32 %v1889_v27, %v1861_v32  ;;  %v2127_v24 = vsel %vm273_vm8, %v3164_v21, 0  ;;  %v3166_v27 = vld [vmem:[%s4041_s2 + $0x8] sm:$0xff] }
0x1144   :  { %v1894_v22 = vmul.f32 %v1890_v29, %v1862_v41  ;;  %v3167_v29 = vld [vmem:[%s4041_s2 + $0x48] sm:$0xff]  ;;  %v3169_v41 = vld [vmem:[%s4041_s2 + $0x40] sm:$0xff] }
0x1148   :  { %v3131_v28 = vpop.eup %3130 }
0x1149   :  { %v3133_v31 = vpop.eup %3132  ;;  %v1891_v38 = vadd.f32 1.0, %v3131_v28  ;;  %v2124_v28 = vsel %vm273_vm8, %v3166_v27, 0 }
0x114a   :  { %v1892_v43 = vadd.f32 1.0, %v3133_v31  ;;  %v2148_v31 = vsel %vm273_vm8, %v3167_v29, 0 }
0x114b   :  { %v1895_v34 = vmul.f32 %v1891_v38, %v1863_v35  ;;  %v3168_v35 = vld [vmem:[%s4041_s2] sm:$0xff] }
0x114c   :  { %v1896_v46 = vmul.f32 %v1892_v43, %v1864_v42  ;;  %v2121_v38 = vsel %vm273_vm8, %v3168_v35, 0  ;;  %v2145_v42 = vsel %vm273_vm8, %v3169_v41, 0 }
0x114d   :  { %v1897_v47 = vpack.c.bf16 %v1895_v34, %v1893_v44 }
0x114e   :  { %v1898_v48 = vpack.c.bf16 %v1896_v46, %v1894_v22 }
0x114f   :  { %2037 = vmatmul.bf16.vlgmr.msrb.gmra.mxu2 %v1897_v47 }
0x1150   :  { %2051 = vmatmul.bf16.vlgmr.msra.gmra.mxu3 %v1898_v48 }
0x11d2   :  { %v2038_v49 = vpop.f32.mrf.mxu2 }
0x11d3   :  { %v2039_v62 = vadd.f32 %v2038_v49, %v1932_v57  ;;  %v2052_v36 = vpop.f32.mrf.mxu3 }
0x11d5   :  { %v2053_v58 = vadd.f32 %v2052_v36, %v2039_v62 }
0x11d7   :  { %v2057_v39 = vadd.f32 %v2053_v58, %v3884_v23  ;;  %v3155_v23 = vld [vmem:[%s4041_s2 + $0x78] sm:$0xff] }
0x11d8   :  { %v2166_v37 = vsel %vm273_vm8, %v3155_v23, 0  ;;  %v2060_v23 = vld [vmem:[%s4046_s7 + $0x22] ss:$0 sm:$0xff] }
0x11d9   :  { %v2061_v53 = vsel %vm273_vm8, %v2057_v39, 0.0  ;;  %2182 = vmatpush.bf16.xpose.msrb.mxu1 %v2166_v37 }
0x11da   :  { %v2040_v30 = vpop.f32.mrf.mxu2  ;;  %2062 = vadd.xlane.f32.xlu1 %v2061_v53 }
0x11db   :  { %v2041_v63 = vadd.f32 %v2040_v30, %v1932_v57  ;;  %v2054_v54 = vpop.f32.mrf.mxu3 }
0x11dd   :  { %v2055_v45 = vadd.f32 %v2054_v54, %v2041_v63 }
0x11df   :  { %v2058_v33 = vadd.f32 %v2055_v45, %v3886_v0  ;;  %v3156_v0 = vld [vmem:[%s4041_s2 + $0x30] sm:$0xff]  ;;  %v2059_v45 = vld [vmem:[%s4046_s7 + $0x21] ss:$0 sm:$0xff] }
0x11e0   :  { %v2139_v59 = vsel %vm273_vm8, %v3156_v0, 0 }
0x11e1   :  { %v2064_v55 = vsel %vm273_vm8, %v2058_v33, 0.0  ;;  %2169 = vmatpush.bf16.xpose.msra.mxu0 %v2139_v59  ;;  %2183 = vmatpush.bf16.xpose.msrb.mxu1 %v2163_v61  ;;  %v2928_v61 = vld [vmem:[%s4046_s7 + $0x32] ss:$8 sm:$0x3]  ;;  %s3201_s7 = smov [#allocation2]  }
0x11e2   :  { %2065 = vadd.xlane.f32.xlu0 %v2064_v55  ;;  %v2113_v1 = vperm.slane %v2928_v61, 0  ;;  %s2260_s4 = sshll.u32 %s3201_s7, 4  ;;  %s2261_s4 = int_to_ptr.vmem [resolvable:$true] %s2260_s4 }
0x11e9   :  { %2170 = vmatpush.bf16.xpose.msra.mxu0 %v2136_v2  ;;  %2184 = vmatpush.bf16.xpose.msrb.mxu1 %v2160_v4  ;;  %v2114_v2 = vperm.slane %v2928_v61, 1 }
0x11f1   :  { %2171 = vmatpush.bf16.xpose.msra.mxu0 %v2133_v9  ;;  %2185 = vmatpush.bf16.xpose.msrb.mxu1 %v2157_v11 }
0x11f9   :  { %2172 = vmatpush.bf16.xpose.msra.mxu0 %v2130_v18  ;;  %2186 = vmatpush.bf16.xpose.msrb.mxu1 %v2154_v20 }
0x1201   :  { %2173 = vmatpush.bf16.xpose.msra.mxu0 %v2127_v24  ;;  %2187 = vmatpush.bf16.xpose.msrb.mxu1 %v2151_v26 }
0x1209   :  { %2174 = vmatpush.bf16.xpose.msra.mxu0 %v2124_v28  ;;  %2188 = vmatpush.bf16.xpose.msrb.mxu1 %v2148_v31 }
0x1211   :  { %2175 = vmatpush.bf16.xpose.msra.mxu0 %v2121_v38  ;;  %2189 = vmatpush.bf16.xpose.msrb.mxu1 %v2145_v42 }
0x124d   :  { %v2063_v5 = vpop.xlane.xlu1 %2062 }
0x124e   :  { %v2067_v6 = vmul.f32 %v2063_v5, %v3484_v52 }
0x1250   :  { %v3975_v7 = vsub.f32 %v2057_v39, %v2067_v6 }
0x1252   :  { %v2071_v8 = vmul.f32 %v3975_v7, %v3975_v7 }
0x1254   :  { %v2073_v12 = vsel %vm273_vm8, %v2071_v8, 0.0 }
0x1255   :  { %v2066_v51 = vpop.xlane.xlu0 %2065  ;;  %2074 = vadd.xlane.f32.xlu2 %v2073_v12 }
0x1256   :  { %v2068_v13 = vmul.f32 %v2066_v51, %v3484_v52 }
0x1258   :  { %v2070_v14 = vsub.f32 %v2058_v33, %v2068_v13 }
0x125a   :  { %v2072_v15 = vmul.f32 %v2070_v14, %v2070_v14 }
0x125c   :  { %v2076_v16 = vsel %vm273_vm8, %v2072_v15, 0.0 }
0x125d   :  { %2077 = vadd.xlane.f32.xlu1 %v2076_v16 }
0x12c8   :  { %v2075_v32 = vpop.xlane.xlu2 %2074 }
0x12c9   :  { %v2079_v43 = vmul.f32 %v2075_v32, %v3484_v52 }
0x12cb   :  { %v2081_v44 = vadd.f32 1e-05, %v2079_v43 }
0x12cd   :  { %3134 = vrsqrt.f32 %v2081_v44  ;;  %vm2089_vm6 = vweird.f32 %v2081_v44 }
0x12d0   :  { %v2078_v34 = vpop.xlane.xlu1 %2077 }
0x12d1   :  { %v2080_v22 = vmul.f32 %v2078_v34, %v3484_v52 }
0x12d3   :  { %v3135_v46 = vpop.eup %3134  ;;  %v2082_v47 = vadd.f32 1e-05, %v2080_v22 }
0x12d4   :  { %v2084_v48 = vmul.f32 %v3135_v46, %v2081_v44  ;;  %vm2090_vm5 = vweird.f32 %v3135_v46 }
0x12d5   :  { %3136 = vrsqrt.f32 %v2082_v47  ;;  %vm2091_vm7 = vmor %vm2089_vm6, %vm2090_vm5  ;;  %vm2099_vm12 = vweird.f32 %v2082_v47 }
0x12d6   :  { %v2085_v57 = vmul.f32 %v3135_v46, %v2084_v48 }
0x12d8   :  { %v2086_v49 = vmul.f32 0.5, %v2085_v57 }
0x12da   :  { %v2087_v62 = vsub.f32 1.5, %v2086_v49 }
0x12db   :  { %v3137_v36 = vpop.eup %3136 }
0x12dc   :  { %v2088_v58 = vmul.f32 %v3135_v46, %v2087_v62  ;;  %v2094_v39 = vmul.f32 %v3137_v36, %v2082_v47  ;;  %vm2100_vm11 = vweird.f32 %v3137_v36 }
0x12dd   :  { %vm2101_vm13 = vmor %vm2099_vm12, %vm2100_vm11 }
0x12de   :  { %v2095_v53 = vmul.f32 %v3137_v36, %v2094_v39  ;;  %v2092_v30 = vsel %vm2091_vm7, %v3135_v46, %v2088_v58 }
0x12df   :  { %v2103_v52 = vmul.f32 %v2092_v30, %v3975_v7 }
0x12e0   :  { %v2096_v63 = vmul.f32 0.5, %v2095_v53 }
0x12e1   :  { %v2105_v56 = vmul.f32 %v2103_v52, %v2059_v45 }
0x12e2   :  { %v2097_v54 = vsub.f32 1.5, %v2096_v63 }
0x12e3   :  { %v2107_v0 = vadd.f32 %v2105_v56, %v2060_v23 }
0x12e4   :  { %v2098_v33 = vmul.f32 %v3137_v36, %v2097_v54 }
0x12e6   :  { %v2102_v55 = vsel %vm2101_vm13, %v3137_v36, %v2098_v33 }
0x12e7   :  { %v2104_v40 = vmul.f32 %v2102_v55, %v2070_v14 }
0x12e9   :  { %v2106_v37 = vmul.f32 %v2104_v40, %v2059_v45 }
0x12eb   :  { %v2108_v59 = vadd.f32 %v2106_v37, %v2060_v23 }
0x12ed   :  { %v2109_v60 = vpack.c.bf16 %v2108_v59, %v2107_v0 }
0x12ef   :  { %2929 = vmatmul.msk.bf16.vlgmr.msra.gmra.mxu0 %vm273_vm8, %v2109_v60  ;;  %2930 = vmatmul.msk.bf16.vlgmr.msrb.gmra.mxu1 %vm273_vm8, %v2109_v60 }
0x136c   :  { %v2177_v3 = vpop.f32.mrf.mxu0  ;;  %v2191_v4 = vpop.f32.mrf.mxu1 }
0x136d   :  { %v2178_v5 = vadd.f32 %v2177_v3, %v2113_v1  ;;  %v2192_v6 = vadd.f32 %v2191_v4, %v2114_v2 }
0x136f   :  { %v2196_v7 = vmax.f32 %v2178_v5, %v2192_v6 }
0x1371   :  { %2197 = vmax.xlane.f32.xlu2 %v2196_v7 }
0x1374   :  { %v2179_v8 = vpop.f32.mrf.mxu0  ;;  %v2193_v50 = vpop.f32.mrf.mxu1 }
0x1375   :  { %v2180_v9 = vadd.f32 %v2179_v8, %v2113_v1  ;;  %v2194_v10 = vadd.f32 %v2193_v50, %v2114_v2 }
0x1377   :  { %v2199_v11 = vmax.f32 %v2180_v9, %v2194_v10 }
0x1379   :  { %2200 = vmax.xlane.f32.xlu1 %v2199_v11 }
0x13e4   :  { %v2198_v12 = vpop.xlane.xlu2 %2197 }
0x13e5   :  { %v2202_v51 = vsub.f32 %v2178_v5, %v2198_v12  ;;  %v2203_v13 = vsub.f32 %v2192_v6, %v2198_v12 }
0x13e7   :  { %v2206_v14 = vmul.f32 1.442695, %v2202_v51  ;;  %v2208_v15 = vmul.f32 1.442695, %v2203_v13 }
0x13e9   :  { %3138 = vpow2.f32 %v2206_v14 }
0x13ea   :  { %3140 = vpow2.f32 %v2208_v15 }
0x13ec   :  { %v2201_v16 = vpop.xlane.xlu1 %2200 }
0x13ed   :  { %v2204_v17 = vsub.f32 %v2180_v9, %v2201_v16  ;;  %v2205_v18 = vsub.f32 %v2194_v10, %v2201_v16 }
0x13ef   :  { %v3139_v19 = vpop.eup %3138  ;;  %v2210_v20 = vmul.f32 1.442695, %v2204_v17  ;;  %v2212_v21 = vmul.f32 1.442695, %v2205_v18 }
0x13f0   :  { %v3141_v24 = vpop.eup %3140 }
0x13f1   :  { %3142 = vpow2.f32 %v2210_v20  ;;  %v2214_v25 = vadd.f32 %v3141_v24, %v3139_v19 }
0x13f2   :  { %3144 = vpow2.f32 %v2212_v21 }
0x13f3   :  { %2215 = vadd.xlane.f32.xlu2 %v2214_v25 }
0x13f7   :  { %v3143_v26 = vpop.eup %3142 }
0x13f8   :  { %v3145_v27 = vpop.eup %3144 }
0x13f9   :  { %v2217_v28 = vadd.f32 %v3145_v27, %v3143_v26 }
0x13fb   :  { %2218 = vadd.xlane.f32.xlu1 %v2217_v28 }
0x1466   :  { %v2216_v29 = vpop.xlane.xlu2 %2215 }
0x1467   :  { %3146 = vrcp.f32 %v2216_v29  ;;  %v2231_v41 = vand.u32 2147483648, %v2216_v29  ;;  %v2229_v43 = vand.u32 2147483647, %v2216_v29  ;;  %vm2225_vm14 = vweird.f32 %v2216_v29 }
0x1469   :  { %v2232_v22 = vor.u32 1.1754944e-38, %v2231_v41  ;;  %vm2230_vm0 = vcmp.eq.f32.partialorder %v2229_v43, 8.507059e+37 }
0x146d   :  { %v3147_v31 = vpop.eup %3146 }
0x146e   :  { %v2221_v32 = vmul.f32 %v3147_v31, %v2216_v29  ;;  %v2219_v35 = vpop.xlane.xlu1 %2218  ;;  %vm2226_vm8 = vweird.f32 %v3147_v31 }
0x146f   :  { %3148 = vrcp.f32 %v2219_v35  ;;  %vm2227_vm15 = vmor %vm2225_vm14, %vm2226_vm8  ;;  %v2247_v36 = vand.u32 2147483648, %v2219_v35  ;;  %v2245_v39 = vand.u32 2147483647, %v2219_v35  ;;  %vm2241_vm10 = vweird.f32 %v2219_v35 }
0x1470   :  { %v2222_v38 = vsub.f32 1.0, %v2221_v32 }
0x1471   :  { %v2248_v30 = vor.u32 1.1754944e-38, %v2247_v36  ;;  %vm2246_vm2 = vcmp.eq.f32.partialorder %v2245_v39, 8.507059e+37 }
0x1472   :  { %v2223_v42 = vmul.f32 %v3147_v31, %v2222_v38 }
0x1474   :  { %v2224_v44 = vadd.f32 %v3147_v31, %v2223_v42 }
0x1475   :  { %v3149_v34 = vpop.eup %3148 }
0x1476   :  { %v2228_v46 = vsel %vm2227_vm15, %v3147_v31, %v2224_v44  ;;  %v2237_v47 = vmul.f32 %v3149_v34, %v2219_v35  ;;  %vm2242_vm9 = vweird.f32 %v3149_v34 }
0x1477   :  { %v2233_v48 = vsel %vm2230_vm0, %v2232_v22, %v2228_v46  ;;  %vm2243_vm1 = vmor %vm2241_vm10, %vm2242_vm9 }
0x1478   :  { %v2234_v57 = vmul.f32 %v3139_v19, %v2233_v48  ;;  %v2235_v49 = vmul.f32 %v3141_v24, %v2233_v48  ;;  %v2238_v62 = vsub.f32 1.0, %v2237_v47 }
0x147a   :  { %2252 = vst [vmem:[#allocation2] sm:$0xff] %v2234_v57  ;;  %v2239_v58 = vmul.f32 %v3149_v34, %v2238_v62 }
0x147b   :  { %2253 = vst [vmem:[#allocation2 + $0x8] sm:$0xff] %v2235_v49 }
0x147c   :  { %v2240_v53 = vadd.f32 %v3149_v34, %v2239_v58 }
0x147e   :  { %v2244_v63 = vsel %vm2243_vm1, %v3149_v34, %v2240_v53 }
0x147f   :  { %v2249_v54 = vsel %vm2246_vm2, %v2248_v30, %v2244_v63 }
0x1480   :  { %v2250_v52 = vmul.f32 %v3143_v26, %v2249_v54  ;;  %v2251_v45 = vmul.f32 %v3145_v27, %v2249_v54 }
0x1482   :  { %2254 = vst [vmem:[#allocation2 + $0x10] sm:$0xff] %v2250_v52 }
0x1483   :  { %2255 = vst [vmem:[#allocation2 + $0x18] sm:$0xff] %v2251_v45 }
0x1484   :  { %2268 = dma.vmem_to_hbm [thread:$0]  %s2261_s4, 512, %s2263_s26, [#allocation3], %s3202_s3, %s3202_s3, %s3203_s27  }
0x1485   :  { %3194 = dma.done.wait [#allocation3], 512  }
0x1486   :  { %3195 = vsyncadd [#allocation3], 4294966784 }
0x1487   :  { %2273 = vsyncpa [#allocation3], 1 }

</bundles_post_ra>
